<compile_context>
chip_gen: v7x
topology: tpu7x:2x2x1
jax: 0.10.0
libtpu: 0.0.40
codegen_flags: <defaults>
</compile_context>

<pallas_src>
import math
import jax
import jax.numpy as jnp
from jax.experimental import pallas as pl
from jax.experimental.pallas import tpu as pltpu

D = 128                 # hidden_size / emb_size / inner_size (fixed by the module)
LN_EPS_OUTER = 1e-12    # SASRec.LayerNorm eps
LN_EPS_LAYER = 1e-8     # TransformerLayer LayerNorm eps


# ----------------------------- in-kernel helpers -----------------------------

def _gelu_tanh(x):
    # tanh-approximate GELU: one EUP tanh + ~5 VALU ops.
    # TODO(synk): ~1e-3-level numeric difference vs the reference's erf-GELU.
    c = math.sqrt(2.0 / math.pi)
    return 0.5 * x * (1.0 + jnp.tanh(c * (x + 0.044715 * x * x * x)))


def _layernorm(h, w, b, eps):
    mu = jnp.mean(h, axis=-1, keepdims=True)
    var = jnp.mean((h - mu) ** 2, axis=-1, keepdims=True)
    return (h - mu) * jax.lax.rsqrt(var + eps) * w + b


# --------------------------------- the kernel --------------------------------

def sasrec_kernel(x_ref,      # (TB, L, D)  item_emb + position_emb
                  sl_ref,     # (TB, 1, 1)  seq_len (float)
                  mk_ref,     # (TB, L, 1)  item mask (float)
                  wm_ref,     # (6, D, D)   [Wv, Wdense, Wff1, Wff2, Wglu1, Wglu2]
                  vec_ref,    # (12, D)     ln0_w, ln0_b, bv, bo, ln1_w, ln1_b,
                              #             bff1, bff2, ln2_w, ln2_b, glu1_b, w_2
                  out_ref):   # (1, TB, D)  session embeddings for this block
    TB, L, _ = x_ref.shape
    V = vec_ref[...]                                  # (12, D)
    ln0_w, ln0_b = V[0:1], V[1:2]
    bv, bo = V[2:3], V[3:4]
    ln1_w, ln1_b = V[4:5], V[5:6]
    bff1, bff2 = V[6:7], V[7:8]
    ln2_w, ln2_b = V[8:9], V[9:10]
    glu1_b = V[10:11]
    w2 = V[11:12]

    # --- input LayerNorm (eps=1e-12); dropout is identity (inference) ---
    # TODO(synk): nn.Dropout(p=0.5) is stochastic in train mode; kernel implements
    # deterministic inference semantics (dropout == identity).
    x = x_ref[...].reshape(TB * L, D)                 # flatten for dense projections
    h0 = _layernorm(x, ln0_w, ln0_b, LN_EPS_OUTER)    # (TB*L, D)

    # --- MultiHeadAttention (n_heads=1, head_size=128) ---
    # softmax_x normalizes over the size-1 heads axis, so attention_probs == 1
    # everywhere: context[b, i] = sum_j v[b, j].  q/k/scores/attention-mask are
    # dead code and dense(context) is constant across the sequence dimension.
    # TODO(synk): confirm with the model owner that this reference behavior
    # (softmax over dim=1, almost certainly a dim bug) is what to reproduce.
    v = jnp.dot(h0, wm_ref[0], preferred_element_type=jnp.float32) + bv  # (TB*L, D)
    ctx = jnp.sum(v.reshape(TB, L, D), axis=1)                            # (TB, D)
    attn = jnp.dot(ctx, wm_ref[1], preferred_element_type=jnp.float32) + bo  # (TB, D)
    h1 = _layernorm((h0.reshape(TB, L, D) + attn[:, None, :]).reshape(TB * L, D),
                    ln1_w, ln1_b, LN_EPS_LAYER)                           # (TB*L, D)

    # --- FeedForward ---
    ff = jnp.dot(h1, wm_ref[2], preferred_element_type=jnp.float32) + bff1
    ff = _gelu_tanh(ff)
    ff = jnp.dot(ff, wm_ref[3], preferred_element_type=jnp.float32) + bff2
    h2 = _layernorm(ff + h1, ln2_w, ln2_b, LN_EPS_LAYER)                  # (TB*L, D)
    h2_3 = h2.reshape(TB, L, D)

    # --- generate_sess_emb ---
    sl = sl_ref[...].reshape(TB, 1)                                       # (TB, 1)
    hs = jnp.sum(h2_3, axis=1) / sl                                       # (TB, D)
    nh = jnp.tanh(h2)                                                     # (TB*L, D)
    gate = (jnp.dot(nh, wm_ref[4], preferred_element_type=jnp.float32)
            + glu1_b).reshape(TB, L, D)                                   # glu1
    gate = gate + jnp.dot(hs, wm_ref[5],
                          preferred_element_type=jnp.float32)[:, None, :]  # glu2 (no bias)
    nh = jax.nn.sigmoid(gate)                                             # (TB, L, D)
    beta = jnp.sum(nh * w2, axis=-1, keepdims=True)                       # (TB, L, 1) == nh @ w_2
    sess = beta * mk_ref[...]                                             # (TB, L, 1)
    out_ref[0] = jnp.sum(sess * h2_3, axis=1)                             # (TB, D)


# ------------------------------ JAX glue (mapping) ----------------------------

def build_item_embedding(params, item_list):
    """Faithful port of SASRec.mapping + merge_STT (t=2) + zero-row concat."""
    blk = [[169, 241], [16, 8]]
    r1, t = 100, 2
    n = item_list.shape[0]
    idx0 = item_list // blk[0][1]                                   # floor(item / 241)
    idx1 = item_list % blk[0][1]                                    # item mod 241
    m0 = params["emb0"].reshape(blk[0][0], blk[1][0] * r1)[idx0]    # (N, 1600)
    m0 = m0.reshape(n, blk[1][0], r1)                               # (N, 16, 100)
    m1 = params["emb1"].reshape(r1 // t, blk[0][1], blk[1][1] // t)[:, idx1, :]  # (50, N, 4)
    m1 = m1.reshape(n, r1 // t, blk[1][1] // t)                     # (N, 50, 4)  (reshape, not transpose — faithful)
    e_even = jnp.einsum("nij,njk->nik", m0[:, :, 0::2], m1)         # (N, 16, 4)
    e_odd = jnp.einsum("nij,njk->nik", m0[:, :, 1::2], m1)          # (N, 16, 4)
    emb = jnp.concatenate([e_even, e_odd], axis=-1)                 # (N, 16, 8)
    embT = jnp.swapaxes(emb, 1, 2)                                  # (N, 8, 16)
    perm = [0, 4, 1, 5, 2, 6, 3, 7]                                 # interleave halves
    embT = embT[:, jnp.asarray(perm), :]
    mapped = jnp.swapaxes(embT, 1, 2).reshape(n, D)                 # (N, 128)
    zero = jnp.zeros((1, D), jnp.float32)
    return jnp.concatenate([zero, mapped], axis=0)                  # (N+1, 128)


def sasrec_forward(params, item_seq, seq_len, mask, item_list, tb=8):
    B, L = item_seq.shape

    embedding = build_item_embedding(params, item_list)             # (N+1, D)
    seq_h = embedding[item_seq]                                     # (B, L, D)
    pos_emb = params["pos_emb"][:L]                                 # (L, D)
    x = (seq_h + pos_emb[None]).astype(jnp.float32)                 # (B, L, D)

    mk = mask.astype(jnp.float32)[:, :, None]                       # (B, L, 1)
    sl = seq_len.astype(jnp.float32).reshape(B, 1, 1)               # (B, 1, 1)

    # Batch TB sequences per grid step (amortizes per-step overhead and gives
    # the MXU M = TB*L rows).  Pad the batch to a multiple of TB; padded rows
    # use seq_len=1 / mask=0 and are dropped afterwards.
    TB = min(tb, B)
    G = pl.cdiv(B, TB)                                              # for v7x prefer even G
    Bp = G * TB
    if Bp != B:
        pad = Bp - B
        x = jnp.pad(x, ((0, pad), (0, 0), (0, 0)))
        mk = jnp.pad(mk, ((0, pad), (0, 0), (0, 0)))
        sl = jnp.pad(sl, ((0, pad), (0, 0), (0, 0)), constant_values=1.0)

    out = pl.pallas_call(
        sasrec_kernel,
        out_shape=jax.ShapeDtypeStruct((G, TB, D), jnp.float32),
        grid=(G,),
        in_specs=[
            pl.BlockSpec((TB, L, D), lambda g: (g, 0, 0)),          # x
            pl.BlockSpec((TB, 1, 1), lambda g: (g, 0, 0)),          # seq_len (float)
            pl.BlockSpec((TB, L, 1), lambda g: (g, 0, 0)),          # item mask
            pl.BlockSpec((6, D, D), lambda g: (0, 0, 0)),           # weight matrices
            pl.BlockSpec((12, D), lambda g: (0, 0)),                # weight vectors
        ],
        out_specs=pl.BlockSpec((1, TB, D), lambda g: (g, 0, 0)),
        compiler_params=pltpu.CompilerParams(dimension_semantics=("parallel",)),
    )(x, sl, mk, params["wm"], params["vec"])

    sess_emb = out.reshape(Bp, D)[:B]                               # drop batch padding
    return sess_emb, embedding


# ----------------------------------- driver -----------------------------------

if __name__ == "__main__":
    key = jax.random.PRNGKey(0)
    B, L = 4, 8            # small batch / seq (module hardcodes 100 / <=300)
    N_ITEMS = 12
    keys = jax.random.split(key, 8)

    def u(k, shape):
        # SASRec._init_weights sets every parameter ~ Uniform(-0.1, 0.1)
        return jax.random.uniform(k, shape, jnp.float32, -0.1, 0.1)

    params = {
        "pos_emb": u(keys[0], (300, D)),          # nn.Embedding(max_seq_length, 128)
        "emb0": u(keys[1], (169 * 16, 100)),      # nn.Embedding(2704, 100)
        "emb1": u(keys[2], (50, 964)),            # nn.Embedding(50, 964)
        # Wv, Wdense, Wff1, Wff2, Wglu1, Wglu2 — each (in, out) = (128, 128).
        # (Wq / Wk are dead in this forward — see kernel comment — and omitted.)
        "wm": u(keys[3], (6, D, D)),
        # ln0_w, ln0_b, bv, bo, ln1_w, ln1_b, bff1, bff2, ln2_w, ln2_b, glu1_b, w_2
        "vec": u(keys[4], (12, D)),
    }

    item_list = jax.random.randint(keys[5], (N_ITEMS,), 0, 169 * 241, dtype=jnp.int32)
    item_seq = jax.random.randint(keys[6], (B, L), 0, N_ITEMS + 1, dtype=jnp.int32)
    # ensure at least one non-padding item per row (seq_len >= 1)
    item_seq = item_seq.at[:, 0].set(jnp.maximum(item_seq[:, 0], 1))
    mask = (item_seq > 0).astype(jnp.int32)
    seq_len = jnp.sum(mask, axis=1).astype(jnp.int32)

    sess_emb, embedding = sasrec_forward(params, item_seq, seq_len, mask, item_list)
    jax.block_until_ready((sess_emb, embedding))
    assert sess_emb.shape == (B, D) and embedding.shape == (N_ITEMS + 1, D)
    assert bool(jnp.all(jnp.isfinite(sess_emb)))
    print("KERNEL_OK")
</pallas_src>

<mosaic_0001>
module attributes {stable_mosaic.version = 11 : i64} {
  func.func @sasrec_kernel(%arg0: i32, %arg1: memref<4x8x128xf32, #tpu.memory_space<vmem>>, %arg2: memref<4x1x1xf32, #tpu.memory_space<vmem>>, %arg3: memref<4x8x1xf32, #tpu.memory_space<vmem>>, %arg4: memref<6x128x128xf32, #tpu.memory_space<vmem>>, %arg5: memref<12x128xf32, #tpu.memory_space<vmem>>, %arg6: memref<1x4x128xf32, #tpu.memory_space<vmem>>) attributes {dimension_semantics = [#tpu.dimension_semantics<parallel>], iteration_bounds = array<i64: 1>, scalar_prefetch = 0 : i64, scratch_operands = 0 : i64, tpu.core_type = #tpu.core_type<tc>, window_params = [{transform_indices = @transform_0, window_bounds = array<i64: 4, 8, 128>}, {transform_indices = @transform_1, window_bounds = array<i64: 4, 1, 1>}, {transform_indices = @transform_2, window_bounds = array<i64: 4, 8, 1>}, {pipeline_mode = #tpu.pipeline_mode<synchronous>, transform_indices = @transform_3, window_bounds = array<i64: 6, 128, 128>}, {pipeline_mode = #tpu.pipeline_mode<synchronous>, transform_indices = @transform_4, window_bounds = array<i64: 12, 128>}, {transform_indices = @transform_5, window_bounds = array<i64: 1, 4, 128>}]} {
    %c0 = arith.constant 0 : index
    %c0_0 = arith.constant 0 : index
    %0 = vector.load %arg5[%c0, %c0_0] : memref<12x128xf32, #tpu.memory_space<vmem>>, vector<12x128xf32>
    %1 = vector.extract_strided_slice %0 {offsets = [0, 0], sizes = [1, 128], strides = [1, 1]} : vector<12x128xf32> to vector<1x128xf32>
    %2 = vector.extract_strided_slice %0 {offsets = [1, 0], sizes = [1, 128], strides = [1, 1]} : vector<12x128xf32> to vector<1x128xf32>
    %3 = vector.extract_strided_slice %0 {offsets = [2, 0], sizes = [1, 128], strides = [1, 1]} : vector<12x128xf32> to vector<1x128xf32>
    %4 = vector.extract_strided_slice %0 {offsets = [3, 0], sizes = [1, 128], strides = [1, 1]} : vector<12x128xf32> to vector<1x128xf32>
    %5 = vector.extract_strided_slice %0 {offsets = [4, 0], sizes = [1, 128], strides = [1, 1]} : vector<12x128xf32> to vector<1x128xf32>
    %6 = vector.extract_strided_slice %0 {offsets = [5, 0], sizes = [1, 128], strides = [1, 1]} : vector<12x128xf32> to vector<1x128xf32>
    %7 = vector.extract_strided_slice %0 {offsets = [6, 0], sizes = [1, 128], strides = [1, 1]} : vector<12x128xf32> to vector<1x128xf32>
    %8 = vector.extract_strided_slice %0 {offsets = [7, 0], sizes = [1, 128], strides = [1, 1]} : vector<12x128xf32> to vector<1x128xf32>
    %9 = vector.extract_strided_slice %0 {offsets = [8, 0], sizes = [1, 128], strides = [1, 1]} : vector<12x128xf32> to vector<1x128xf32>
    %10 = vector.extract_strided_slice %0 {offsets = [9, 0], sizes = [1, 128], strides = [1, 1]} : vector<12x128xf32> to vector<1x128xf32>
    %11 = vector.extract_strided_slice %0 {offsets = [10, 0], sizes = [1, 128], strides = [1, 1]} : vector<12x128xf32> to vector<1x128xf32>
    %12 = vector.extract_strided_slice %0 {offsets = [11, 0], sizes = [1, 128], strides = [1, 1]} : vector<12x128xf32> to vector<1x128xf32>
    %c0_1 = arith.constant 0 : index
    %c0_2 = arith.constant 0 : index
    %c0_3 = arith.constant 0 : index
    %13 = vector.load %arg1[%c0_1, %c0_2, %c0_3] : memref<4x8x128xf32, #tpu.memory_space<vmem>>, vector<4x8x128xf32>
    %14 = vector.shape_cast %13 : vector<4x8x128xf32> to vector<32x128xf32>
    %cst = arith.constant dense<0.000000e+00> : vector<32xf32>
    %15 = vector.multi_reduction <add>, %14, %cst [1] : vector<32x128xf32> to vector<32xf32>
    %16 = vector.shape_cast %15 : vector<32xf32> to vector<32x1xf32>
    %cst_4 = arith.constant 1.280000e+02 : f32
    %17 = vector.broadcast %cst_4 : f32 to vector<32x1xf32>
    %18 = arith.divf %16, %17 : vector<32x1xf32>
    %19 = vector.broadcast %18 : vector<32x1xf32> to vector<32x128xf32>
    %20 = arith.subf %14, %19 : vector<32x128xf32>
    %21 = arith.mulf %20, %20 : vector<32x128xf32>
    %cst_5 = arith.constant dense<0.000000e+00> : vector<32xf32>
    %22 = vector.multi_reduction <add>, %21, %cst_5 [1] : vector<32x128xf32> to vector<32xf32>
    %23 = vector.shape_cast %22 : vector<32xf32> to vector<32x1xf32>
    %cst_6 = arith.constant 1.280000e+02 : f32
    %24 = vector.broadcast %cst_6 : f32 to vector<32x1xf32>
    %25 = arith.divf %23, %24 : vector<32x1xf32>
    %26 = vector.broadcast %18 : vector<32x1xf32> to vector<32x128xf32>
    %27 = arith.subf %14, %26 : vector<32x128xf32>
    %cst_7 = arith.constant 9.99999996E-13 : f32
    %28 = vector.broadcast %cst_7 : f32 to vector<32x1xf32>
    %29 = arith.addf %25, %28 : vector<32x1xf32>
    %30 = math.rsqrt %29 : vector<32x1xf32>
    %31 = vector.broadcast %30 : vector<32x1xf32> to vector<32x128xf32>
    %32 = arith.mulf %27, %31 : vector<32x128xf32>
    %33 = vector.broadcast %1 : vector<1x128xf32> to vector<32x128xf32>
    %34 = arith.mulf %32, %33 : vector<32x128xf32>
    %35 = vector.broadcast %2 : vector<1x128xf32> to vector<32x128xf32>
    %36 = arith.addf %34, %35 : vector<32x128xf32>
    %c0_8 = arith.constant 0 : index
    %c0_9 = arith.constant 0 : index
    %c0_10 = arith.constant 0 : index
    %37 = vector.load %arg4[%c0_8, %c0_9, %c0_10] : memref<6x128x128xf32, #tpu.memory_space<vmem>>, vector<1x128x128xf32>
    %38 = vector.shape_cast %37 : vector<1x128x128xf32> to vector<128x128xf32>
    %cst_11 = arith.constant dense<0.000000e+00> : vector<32x128xf32>
    %39 = tpu.matmul %36, %38, %cst_11 {dimension_numbers = #tpu.dot_dimension_numbers<[1], [0], [0], [1], [0, 0, 1, 1], [], []>} : vector<32x128xf32>, vector<128x128xf32>, vector<32x128xf32> -> vector<32x128xf32>
    %40 = vector.broadcast %3 : vector<1x128xf32> to vector<32x128xf32>
    %41 = arith.addf %39, %40 : vector<32x128xf32>
    %42 = vector.shape_cast %41 : vector<32x128xf32> to vector<4x8x128xf32>
    %cst_12 = arith.constant dense<0.000000e+00> : vector<4x128xf32>
    %43 = vector.multi_reduction <add>, %42, %cst_12 [1] : vector<4x8x128xf32> to vector<4x128xf32>
    %c1 = arith.constant 1 : index
    %c0_13 = arith.constant 0 : index
    %c0_14 = arith.constant 0 : index
    %44 = vector.load %arg4[%c1, %c0_13, %c0_14] : memref<6x128x128xf32, #tpu.memory_space<vmem>>, vector<1x128x128xf32>
    %45 = vector.shape_cast %44 : vector<1x128x128xf32> to vector<128x128xf32>
    %cst_15 = arith.constant dense<0.000000e+00> : vector<4x128xf32>
    %46 = tpu.matmul %43, %45, %cst_15 {dimension_numbers = #tpu.dot_dimension_numbers<[1], [0], [0], [1], [0, 0, 1, 1], [], []>} : vector<4x128xf32>, vector<128x128xf32>, vector<4x128xf32> -> vector<4x128xf32>
    %47 = vector.broadcast %4 : vector<1x128xf32> to vector<4x128xf32>
    %48 = arith.addf %46, %47 : vector<4x128xf32>
    %49 = vector.shape_cast %36 : vector<32x128xf32> to vector<4x8x128xf32>
    %50 = vector.shape_cast %48 : vector<4x128xf32> to vector<4x1x128xf32>
    %51 = vector.broadcast %50 : vector<4x1x128xf32> to vector<4x8x128xf32>
    %52 = arith.addf %49, %51 : vector<4x8x128xf32>
    %53 = vector.shape_cast %52 : vector<4x8x128xf32> to vector<32x128xf32>
    %cst_16 = arith.constant dense<0.000000e+00> : vector<32xf32>
    %54 = vector.multi_reduction <add>, %53, %cst_16 [1] : vector<32x128xf32> to vector<32xf32>
    %55 = vector.shape_cast %54 : vector<32xf32> to vector<32x1xf32>
    %cst_17 = arith.constant 1.280000e+02 : f32
    %56 = vector.broadcast %cst_17 : f32 to vector<32x1xf32>
    %57 = arith.divf %55, %56 : vector<32x1xf32>
    %58 = vector.broadcast %57 : vector<32x1xf32> to vector<32x128xf32>
    %59 = arith.subf %53, %58 : vector<32x128xf32>
    %60 = arith.mulf %59, %59 : vector<32x128xf32>
    %cst_18 = arith.constant dense<0.000000e+00> : vector<32xf32>
    %61 = vector.multi_reduction <add>, %60, %cst_18 [1] : vector<32x128xf32> to vector<32xf32>
    %62 = vector.shape_cast %61 : vector<32xf32> to vector<32x1xf32>
    %cst_19 = arith.constant 1.280000e+02 : f32
    %63 = vector.broadcast %cst_19 : f32 to vector<32x1xf32>
    %64 = arith.divf %62, %63 : vector<32x1xf32>
    %65 = vector.broadcast %57 : vector<32x1xf32> to vector<32x128xf32>
    %66 = arith.subf %53, %65 : vector<32x128xf32>
    %cst_20 = arith.constant 9.99999993E-9 : f32
    %67 = vector.broadcast %cst_20 : f32 to vector<32x1xf32>
    %68 = arith.addf %64, %67 : vector<32x1xf32>
    %69 = math.rsqrt %68 : vector<32x1xf32>
    %70 = vector.broadcast %69 : vector<32x1xf32> to vector<32x128xf32>
    %71 = arith.mulf %66, %70 : vector<32x128xf32>
    %72 = vector.broadcast %5 : vector<1x128xf32> to vector<32x128xf32>
    %73 = arith.mulf %71, %72 : vector<32x128xf32>
    %74 = vector.broadcast %6 : vector<1x128xf32> to vector<32x128xf32>
    %75 = arith.addf %73, %74 : vector<32x128xf32>
    %c2 = arith.constant 2 : index
    %c0_21 = arith.constant 0 : index
    %c0_22 = arith.constant 0 : index
    %76 = vector.load %arg4[%c2, %c0_21, %c0_22] : memref<6x128x128xf32, #tpu.memory_space<vmem>>, vector<1x128x128xf32>
    %77 = vector.shape_cast %76 : vector<1x128x128xf32> to vector<128x128xf32>
    %cst_23 = arith.constant dense<0.000000e+00> : vector<32x128xf32>
    %78 = tpu.matmul %75, %77, %cst_23 {dimension_numbers = #tpu.dot_dimension_numbers<[1], [0], [0], [1], [0, 0, 1, 1], [], []>} : vector<32x128xf32>, vector<128x128xf32>, vector<32x128xf32> -> vector<32x128xf32>
    %79 = vector.broadcast %7 : vector<1x128xf32> to vector<32x128xf32>
    %80 = arith.addf %78, %79 : vector<32x128xf32>
    %cst_24 = arith.constant 5.000000e-01 : f32
    %81 = vector.broadcast %cst_24 : f32 to vector<32x128xf32>
    %82 = arith.mulf %81, %80 : vector<32x128xf32>
    %cst_25 = arith.constant 4.471500e-02 : f32
    %83 = vector.broadcast %cst_25 : f32 to vector<32x128xf32>
    %84 = arith.mulf %83, %80 : vector<32x128xf32>
    %85 = arith.mulf %84, %80 : vector<32x128xf32>
    %86 = arith.mulf %85, %80 : vector<32x128xf32>
    %87 = arith.addf %80, %86 : vector<32x128xf32>
    %cst_26 = arith.constant 0.797884583 : f32
    %88 = vector.broadcast %cst_26 : f32 to vector<32x128xf32>
    %89 = arith.mulf %88, %87 : vector<32x128xf32>
    %90 = math.tanh %89 : vector<32x128xf32>
    %cst_27 = arith.constant 1.000000e+00 : f32
    %91 = vector.broadcast %cst_27 : f32 to vector<32x128xf32>
    %92 = arith.addf %91, %90 : vector<32x128xf32>
    %93 = arith.mulf %82, %92 : vector<32x128xf32>
    %c3 = arith.constant 3 : index
    %c0_28 = arith.constant 0 : index
    %c0_29 = arith.constant 0 : index
    %94 = vector.load %arg4[%c3, %c0_28, %c0_29] : memref<6x128x128xf32, #tpu.memory_space<vmem>>, vector<1x128x128xf32>
    %95 = vector.shape_cast %94 : vector<1x128x128xf32> to vector<128x128xf32>
    %cst_30 = arith.constant dense<0.000000e+00> : vector<32x128xf32>
    %96 = tpu.matmul %93, %95, %cst_30 {dimension_numbers = #tpu.dot_dimension_numbers<[1], [0], [0], [1], [0, 0, 1, 1], [], []>} : vector<32x128xf32>, vector<128x128xf32>, vector<32x128xf32> -> vector<32x128xf32>
    %97 = vector.broadcast %8 : vector<1x128xf32> to vector<32x128xf32>
    %98 = arith.addf %96, %97 : vector<32x128xf32>
    %99 = arith.addf %98, %75 : vector<32x128xf32>
    %cst_31 = arith.constant dense<0.000000e+00> : vector<32xf32>
    %100 = vector.multi_reduction <add>, %99, %cst_31 [1] : vector<32x128xf32> to vector<32xf32>
    %101 = vector.shape_cast %100 : vector<32xf32> to vector<32x1xf32>
    %cst_32 = arith.constant 1.280000e+02 : f32
    %102 = vector.broadcast %cst_32 : f32 to vector<32x1xf32>
    %103 = arith.divf %101, %102 : vector<32x1xf32>
    %104 = vector.broadcast %103 : vector<32x1xf32> to vector<32x128xf32>
    %105 = arith.subf %99, %104 : vector<32x128xf32>
    %106 = arith.mulf %105, %105 : vector<32x128xf32>
    %cst_33 = arith.constant dense<0.000000e+00> : vector<32xf32>
    %107 = vector.multi_reduction <add>, %106, %cst_33 [1] : vector<32x128xf32> to vector<32xf32>
    %108 = vector.shape_cast %107 : vector<32xf32> to vector<32x1xf32>
    %cst_34 = arith.constant 1.280000e+02 : f32
    %109 = vector.broadcast %cst_34 : f32 to vector<32x1xf32>
    %110 = arith.divf %108, %109 : vector<32x1xf32>
    %111 = vector.broadcast %103 : vector<32x1xf32> to vector<32x128xf32>
    %112 = arith.subf %99, %111 : vector<32x128xf32>
    %cst_35 = arith.constant 9.99999993E-9 : f32
    %113 = vector.broadcast %cst_35 : f32 to vector<32x1xf32>
    %114 = arith.addf %110, %113 : vector<32x1xf32>
    %115 = math.rsqrt %114 : vector<32x1xf32>
    %116 = vector.broadcast %115 : vector<32x1xf32> to vector<32x128xf32>
    %117 = arith.mulf %112, %116 : vector<32x128xf32>
    %118 = vector.broadcast %9 : vector<1x128xf32> to vector<32x128xf32>
    %119 = arith.mulf %117, %118 : vector<32x128xf32>
    %120 = vector.broadcast %10 : vector<1x128xf32> to vector<32x128xf32>
    %121 = arith.addf %119, %120 : vector<32x128xf32>
    %122 = vector.shape_cast %121 : vector<32x128xf32> to vector<4x8x128xf32>
    %c0_36 = arith.constant 0 : index
    %c0_37 = arith.constant 0 : index
    %c0_38 = arith.constant 0 : index
    %123 = vector.load %arg2[%c0_36, %c0_37, %c0_38] : memref<4x1x1xf32, #tpu.memory_space<vmem>>, vector<4x1x1xf32>
    %124 = vector.shape_cast %123 : vector<4x1x1xf32> to vector<4x1xf32>
    %cst_39 = arith.constant dense<0.000000e+00> : vector<4x128xf32>
    %125 = vector.multi_reduction <add>, %122, %cst_39 [1] : vector<4x8x128xf32> to vector<4x128xf32>
    %126 = vector.broadcast %124 : vector<4x1xf32> to vector<4x128xf32>
    %127 = arith.divf %125, %126 : vector<4x128xf32>
    %128 = math.tanh %121 : vector<32x128xf32>
    %c4 = arith.constant 4 : index
    %c0_40 = arith.constant 0 : index
    %c0_41 = arith.constant 0 : index
    %129 = vector.load %arg4[%c4, %c0_40, %c0_41] : memref<6x128x128xf32, #tpu.memory_space<vmem>>, vector<1x128x128xf32>
    %130 = vector.shape_cast %129 : vector<1x128x128xf32> to vector<128x128xf32>
    %cst_42 = arith.constant dense<0.000000e+00> : vector<32x128xf32>
    %131 = tpu.matmul %128, %130, %cst_42 {dimension_numbers = #tpu.dot_dimension_numbers<[1], [0], [0], [1], [0, 0, 1, 1], [], []>} : vector<32x128xf32>, vector<128x128xf32>, vector<32x128xf32> -> vector<32x128xf32>
    %132 = vector.broadcast %11 : vector<1x128xf32> to vector<32x128xf32>
    %133 = arith.addf %131, %132 : vector<32x128xf32>
    %134 = vector.shape_cast %133 : vector<32x128xf32> to vector<4x8x128xf32>
    %c5 = arith.constant 5 : index
    %c0_43 = arith.constant 0 : index
    %c0_44 = arith.constant 0 : index
    %135 = vector.load %arg4[%c5, %c0_43, %c0_44] : memref<6x128x128xf32, #tpu.memory_space<vmem>>, vector<1x128x128xf32>
    %136 = vector.shape_cast %135 : vector<1x128x128xf32> to vector<128x128xf32>
    %cst_45 = arith.constant dense<0.000000e+00> : vector<4x128xf32>
    %137 = tpu.matmul %127, %136, %cst_45 {dimension_numbers = #tpu.dot_dimension_numbers<[1], [0], [0], [1], [0, 0, 1, 1], [], []>} : vector<4x128xf32>, vector<128x128xf32>, vector<4x128xf32> -> vector<4x128xf32>
    %138 = vector.shape_cast %137 : vector<4x128xf32> to vector<4x1x128xf32>
    %139 = vector.broadcast %138 : vector<4x1x128xf32> to vector<4x8x128xf32>
    %140 = arith.addf %134, %139 : vector<4x8x128xf32>
    %141 = arith.negf %140 : vector<4x8x128xf32>
    %142 = math.exp %141 : vector<4x8x128xf32>
    %cst_46 = arith.constant 1.000000e+00 : f32
    %143 = vector.broadcast %cst_46 : f32 to vector<4x8x128xf32>
    %144 = arith.addf %143, %142 : vector<4x8x128xf32>
    %145 = arith.divf %143, %144 : vector<4x8x128xf32>
    %146 = vector.shape_cast %12 : vector<1x128xf32> to vector<1x1x128xf32>
    %147 = vector.broadcast %146 : vector<1x1x128xf32> to vector<4x8x128xf32>
    %148 = arith.mulf %145, %147 : vector<4x8x128xf32>
    %cst_47 = arith.constant dense<0.000000e+00> : vector<4x8xf32>
    %149 = vector.multi_reduction <add>, %148, %cst_47 [2] : vector<4x8x128xf32> to vector<4x8xf32>
    %150 = vector.shape_cast %149 : vector<4x8xf32> to vector<4x8x1xf32>
    %c0_48 = arith.constant 0 : index
    %c0_49 = arith.constant 0 : index
    %c0_50 = arith.constant 0 : index
    %151 = vector.load %arg3[%c0_48, %c0_49, %c0_50] : memref<4x8x1xf32, #tpu.memory_space<vmem>>, vector<4x8x1xf32>
    %152 = arith.mulf %150, %151 : vector<4x8x1xf32>
    %153 = vector.broadcast %152 : vector<4x8x1xf32> to vector<4x8x128xf32>
    %154 = arith.mulf %153, %122 : vector<4x8x128xf32>
    %cst_51 = arith.constant dense<0.000000e+00> : vector<4x128xf32>
    %155 = vector.multi_reduction <add>, %154, %cst_51 [1] : vector<4x8x128xf32> to vector<4x128xf32>
    %c0_52 = arith.constant 0 : index
    %c0_53 = arith.constant 0 : index
    %c0_54 = arith.constant 0 : index
    %156 = vector.load %arg6[%c0_52, %c0_53, %c0_54] : memref<1x4x128xf32, #tpu.memory_space<vmem>>, vector<1x4x128xf32>
    %157 = vector.shape_cast %156 : vector<1x4x128xf32> to vector<4x128xf32>
    %158 = vector.shape_cast %155 : vector<4x128xf32> to vector<1x4x128xf32>
    tpu.vector_store %arg6[%c0_52, %c0_53, %c0_54], %158 {strides = array<i32>} : memref<1x4x128xf32, #tpu.memory_space<vmem>>, vector<1x4x128xf32>,
    return
  }
  func.func @transform_0(%arg0: i32) -> (i32, i32, i32) {
    %c0_i32 = arith.constant 0 : i32
    %c0_i32_0 = arith.constant 0 : i32
    %c0_i32_1 = arith.constant 0 : i32
    return %arg0, %c0_i32, %c0_i32_0 : i32, i32, i32
  }
  func.func @transform_1(%arg0: i32) -> (i32, i32, i32) {
    %c0_i32 = arith.constant 0 : i32
    %c0_i32_0 = arith.constant 0 : i32
    %c0_i32_1 = arith.constant 0 : i32
    return %arg0, %c0_i32, %c0_i32_0 : i32, i32, i32
  }
  func.func @transform_2(%arg0: i32) -> (i32, i32, i32) {
    %c0_i32 = arith.constant 0 : i32
    %c0_i32_0 = arith.constant 0 : i32
    %c0_i32_1 = arith.constant 0 : i32
    return %arg0, %c0_i32, %c0_i32_0 : i32, i32, i32
  }
  func.func @transform_3(%arg0: i32) -> (i32, i32, i32) {
    %c0_i32 = arith.constant 0 : i32
    %c0_i32_0 = arith.constant 0 : i32
    %c0_i32_1 = arith.constant 0 : i32
    %c0_i32_2 = arith.constant 0 : i32
    return %c0_i32, %c0_i32_0, %c0_i32_1 : i32, i32, i32
  }
  func.func @transform_4(%arg0: i32) -> (i32, i32) {
    %c0_i32 = arith.constant 0 : i32
    %c0_i32_0 = arith.constant 0 : i32
    %c0_i32_1 = arith.constant 0 : i32
    return %c0_i32, %c0_i32_0 : i32, i32
  }
  func.func @transform_5(%arg0: i32) -> (i32, i32, i32) {
    %c0_i32 = arith.constant 0 : i32
    %c0_i32_0 = arith.constant 0 : i32
    %c0_i32_1 = arith.constant 0 : i32
    return %arg0, %c0_i32, %c0_i32_0 : i32, i32, i32
  }
}

</mosaic_0001>

<bundles_post_ra>
// kernel: tpu_custom_call.1
= control target key start
LH: loop header
LB: loop body
LE: loop exit
PB: predicated region body
PF: predicated region fallthrough
CT: control target
= control target key end

     0   :  { %10 = vsyncpa [#allocation3], 0  ;;  %s2155_s0 = inlined_call_operand.vmem [shape: f32[4,8,128], index: 0, kind: input, shape index: {}]   ;;  %s2156_s1 = inlined_call_operand.vmem [shape: f32[4,1,1], index: 1, kind: input, shape index: {}]   ;;  %s2157_s2 = inlined_call_operand.vmem [shape: f32[4,8,1], index: 2, kind: input, shape index: {}]   ;;  %s2158_s3 = inlined_call_operand.hbm [shape: f32[6,128,128], index: 3, kind: input, shape index: {}]   ;;  %s2159_s4 = inlined_call_operand.vmem [shape: f32[12,128], index: 4, kind: input, shape index: {}]   ;;  %s2160_s5 = inlined_call_operand.hbm [shape: f32[1,4,128], index: 5, kind: output, shape index: {}]  }
   0x1   :  { %11 = vsyncpa [#allocation4], 0  ;;  %s1842_s18 = smov [#allocation2]   ;;  %s1794_s22 = scalar_lea.hbm %s2158_s3, 12288 }
   0x2   :  { %s23_s19 = sshll.u32 %s1842_s18, 4  ;;  %p1795_p0 = scmp.ne.s32.totalorder %s2158_s3, %s1794_s22  ;;  %s24_s19 = int_to_ptr.vmem [resolvable:$true] %s23_s19 }
   0x3   :  { %p1798_p1 = scmp.lt.u32.totalorder %s1794_s22, %s2158_s3 }
   0x5   :  { %p1800_p2 = pnand %p1798_p1, %p1795_p0 }
   0x7   :  { %1803 = shalt.err (!%p1800_p2)
}
   0x8   :  { %s1804_s27 = scalar_lea.vmem %s24_s19, 12288  ;;  %p1809_p4 = scmp.lt.s32.totalorder %s24_s19, %s24_s19 }
   0x9   :  { %p1805_p3 = scmp.ne.s32.totalorder %s24_s19, %s1804_s27  ;;  %p1810_p5 = scmp.lt.s32.totalorder %s1804_s27, %s1804_s27 }
   0xb   :  { %p1811_p6 = por %p1810_p5, %p1809_p4 }
   0xd   :  { %p1812_p7 = pnand %p1811_p6, %p1805_p3 }
   0xf   :  { %1815 = shalt.err (!%p1812_p7)
}
  0x10   :  { %s1843_s28 = smov 128   ;;  %s1844_s29 = smov 8  }
  0x11   :  { %29 = dma.hbm_to_vmem [thread:$0]  %s2158_s3, 12288, %s24_s19, [#allocation3], %s1843_s28, %s1843_s28, %s1844_s29  }
  0x12   :  { %1838 = dma.done.wait [#allocation3], 12288  }
  0x13   :  { %1839 = vsyncadd [#allocation3], 4294955008  ;;  %v37_v0 = vld [vmem:[%s2155_s0] sm:$0xff]  ;;  %v39_v1 = vld [vmem:[%s2155_s0 + $0x10] sm:$0xff]  ;;  %v1845_v47 = vmov 0.0|0.0   ;;  %v86_v56 = vlaneseq  ;;  %vm1846_vm0 = vmmov 0  }
  0x14   :  { %41 = vadd.xlane.f32.xlu0 %v37_v0  ;;  %45 = vadd.xlane.f32.xlu1 %v39_v1  ;;  %v38_v2 = vld [vmem:[%s2155_s0 + $0x8] sm:$0xff]  ;;  %v40_v3 = vld [vmem:[%s2155_s0 + $0x18] sm:$0xff]  ;;  %v102_v4 = vld [vmem:[#allocation2] sm:$0xff]  ;;  %vm256_vm1 = vcmask 1041409   ;;  %vm258_vm2 = vcmask 1042434   ;;  %vm260_vm3 = vcmask 1043459  }
  0x15   :  { %v103_v5 = vld [vmem:[#allocation2 + $0x8] sm:$0xff]  ;;  %v104_v6 = vld [vmem:[#allocation2 + $0x10] sm:$0xff]  ;;  %v105_v8 = vld [vmem:[#allocation2 + $0x18] sm:$0xff]  ;;  %1575 = vmatprep.subr.bf16.mxu1 %v1845_v47  ;;  %v1925_v62 = vshrl.u32 %v86_v56, 7 }
  0x16   :  { %v1543_v7 = vpack.c.bf16 %v103_v5, %v102_v4  ;;  %v1547_v9 = vpack.c.bf16 %v105_v8, %v104_v6  ;;  %v106_v26 = vld [vmem:[#allocation2 + $0x20] sm:$0xff]  ;;  %v107_v27 = vld [vmem:[#allocation2 + $0x28] sm:$0xff]  ;;  %v108_v29 = vld [vmem:[#allocation2 + $0x30] sm:$0xff] }
  0x17   :  { %v1551_v28 = vpack.c.bf16 %v107_v27, %v106_v26  ;;  %v109_v30 = vld [vmem:[#allocation2 + $0x38] sm:$0xff]  ;;  %v110_v32 = vld [vmem:[#allocation2 + $0x40] sm:$0xff]  ;;  %v111_v33 = vld [vmem:[#allocation2 + $0x48] sm:$0xff]  ;;  %v96_v6 = vsub.s32 1, %v1925_v62 }
  0x18   :  { %43 = vadd.xlane.f32.xlu0 %v38_v2  ;;  %47 = vadd.xlane.f32.xlu1 %v40_v3  ;;  %v1555_v31 = vpack.c.bf16 %v109_v30, %v108_v29  ;;  %v1559_v34 = vpack.c.bf16 %v111_v33, %v110_v32  ;;  %v112_v35 = vld [vmem:[#allocation2 + $0x50] sm:$0xff]  ;;  %v113_v36 = vld [vmem:[#allocation2 + $0x58] sm:$0xff]  ;;  %v114_v38 = vld [vmem:[#allocation2 + $0x60] sm:$0xff] }
  0x19   :  { %1544 = vmatprep.subr.bf16.mxu0 %v1543_v7  ;;  %v1563_v37 = vpack.c.bf16 %v113_v36, %v112_v35  ;;  %v115_v39 = vld [vmem:[#allocation2 + $0x68] sm:$0xff]  ;;  %v116_v41 = vld [vmem:[#allocation2 + $0x70] sm:$0xff]  ;;  %v117_v42 = vld [vmem:[#allocation2 + $0x78] sm:$0xff] }
  0x1a   :  { %1546 = vmatpush3.bf16.msra.mxu0 %v1543_v7  ;;  %v1567_v40 = vpack.c.bf16 %v115_v39, %v114_v38  ;;  %v1571_v43 = vpack.c.bf16 %v117_v42, %v116_v41  ;;  %v232_v44 = vld [vmem:[#allocation2 + $0x80] sm:$0xff]  ;;  %v233_v45 = vld [vmem:[#allocation2 + $0x88] sm:$0xff]  ;;  %v234_v46 = vld [vmem:[#allocation2 + $0x90] sm:$0xff]  ;;  %v120_v41 = vsub.s32 2, %v1925_v62 }
  0x1b   :  { %1548 = vmatprep.subr.bf16.mxu0 %v1547_v9  ;;  %v1576_v48 = vpack.c.bf16 %v233_v45, %v232_v44  ;;  %v235_v49 = vld [vmem:[#allocation2 + $0x98] sm:$0xff]  ;;  %v236_v51 = vld [vmem:[#allocation2 + $0xa0] sm:$0xff]  ;;  %v237_v52 = vld [vmem:[#allocation2 + $0xa8] sm:$0xff] }
  0x1c   :  { %v1579_v50 = vpack.c.bf16 %v235_v49, %v234_v46  ;;  %v1582_v53 = vpack.c.bf16 %v237_v52, %v236_v51  ;;  %v1933_v5 = vld [vmem:[%s2159_s4] sm:$0xff]  ;;  %v241_v30 = vld [vmem:[#allocation2 + $0xc8] sm:$0xff]  ;;  %v243_v32 = vld [vmem:[#allocation2 + $0xd8] sm:$0xff] }
  0x1d   :  { %1577 = vmatpush3.bf16.msra.mxu1 %v1576_v48  ;;  %v240_v29 = vld [vmem:[#allocation2 + $0xc0] sm:$0xff]  ;;  %v245_v35 = vld [vmem:[#allocation2 + $0xe8] sm:$0xff]  ;;  %v247_v38 = vld [vmem:[#allocation2 + $0xf8] sm:$0xff]  ;;  %v121_v42 = vrot.slane %v1933_v5, %v120_v41 }
  0x1e   :  { %1550 = vmatpush3.bf16.msra.mxu0 %v1547_v9  ;;  %1578 = vmatprep.subr.bf16.mxu1 %v1845_v47 }
  0x1f   :  { %1552 = vmatprep.subr.bf16.mxu0 %v1551_v28 }
  0x21   :  { %1580 = vmatpush3.bf16.msra.mxu1 %v1579_v50 }
  0x22   :  { %1554 = vmatpush3.bf16.msra.mxu0 %v1551_v28  ;;  %1581 = vmatprep.subr.bf16.mxu1 %v1845_v47 }
  0x23   :  { %1556 = vmatprep.subr.bf16.mxu0 %v1555_v31 }
  0x25   :  { %1583 = vmatpush3.bf16.msra.mxu1 %v1582_v53 }
  0x26   :  { %1558 = vmatpush3.bf16.msra.mxu0 %v1555_v31  ;;  %1584 = vmatprep.subr.bf16.mxu1 %v1845_v47  ;;  %v242_v31 = vld [vmem:[#allocation2 + $0xd0] sm:$0xff] }
  0x27   :  { %1560 = vmatprep.subr.bf16.mxu0 %v1559_v34  ;;  %v1591_v33 = vpack.c.bf16 %v243_v32, %v242_v31 }
  0x2a   :  { %1562 = vmatpush3.bf16.msra.mxu0 %v1559_v34  ;;  %v244_v34 = vld [vmem:[#allocation2 + $0xe0] sm:$0xff] }
  0x2b   :  { %1564 = vmatprep.subr.bf16.mxu0 %v1563_v37  ;;  %v1594_v36 = vpack.c.bf16 %v245_v35, %v244_v34 }
  0x2e   :  { %1566 = vmatpush3.bf16.msra.mxu0 %v1563_v37  ;;  %v246_v37 = vld [vmem:[#allocation2 + $0xf0] sm:$0xff] }
  0x2f   :  { %1568 = vmatprep.subr.bf16.mxu0 %v1567_v40  ;;  %v1597_v39 = vpack.c.bf16 %v247_v38, %v246_v37 }
  0x32   :  { %1570 = vmatpush3.bf16.msra.mxu0 %v1567_v40  ;;  %v1847_v40 = vmov 0.0  }
  0x33   :  { %1572 = vmatprep.subr.bf16.mxu0 %v1571_v43  ;;  %1391 = vmatprep.mubr.msk.f32.mxu1 %vm1846_vm0, %v1847_v40 }
  0x36   :  { %1574 = vmatpush3.bf16.msra.mxu0 %v1571_v43 }
  0xa1   :  { %v42_v10 = vpop.xlane.xlu0 %41  ;;  %v46_v11 = vpop.xlane.xlu1 %45 }
  0xa2   :  { %v50_v12 = vmul.f32 0.0078125, %v42_v10  ;;  %v52_v13 = vmul.f32 0.0078125, %v46_v11  ;;  %v97_v10 = vrot.slane %v1933_v5, %v96_v6 }
  0xa4   :  { %v1905_v14 = vsub.f32 %v37_v0, %v50_v12  ;;  %v1907_v15 = vsub.f32 %v39_v1, %v52_v13 }
  0xa5   :  { %v44_v16 = vpop.xlane.xlu0 %43  ;;  %v48_v17 = vpop.xlane.xlu1 %47 }
  0xa6   :  { %v51_v18 = vmul.f32 0.0078125, %v44_v16  ;;  %v58_v19 = vmul.f32 %v1905_v14, %v1905_v14  ;;  %v53_v20 = vmul.f32 0.0078125, %v48_v17  ;;  %v60_v23 = vmul.f32 %v1907_v15, %v1907_v15 }
  0xa8   :  { %v1911_v21 = vsub.f32 %v38_v2, %v51_v18  ;;  %62 = vadd.xlane.f32.xlu0 %v58_v19  ;;  %v1913_v22 = vsub.f32 %v40_v3, %v53_v20  ;;  %v1928_v3 = vsub.s32 0, %v1925_v62 }
  0xaa   :  { %v59_v24 = vmul.f32 %v1911_v21, %v1911_v21  ;;  %v61_v25 = vmul.f32 %v1913_v22, %v1913_v22  ;;  %v89_v7 = vrot.slane %v1933_v5, %v1928_v3 }
  0xac   :  { %66 = vadd.xlane.f32.xlu0 %v60_v23  ;;  %64 = vadd.xlane.f32.xlu1 %v59_v24 }
  0xb0   :  { %68 = vadd.xlane.f32.xlu1 %v61_v25 }
 0x135   :  { %v63_v54 = vpop.xlane.xlu0 %62 }
 0x136   :  { %v70_v55 = vmul.f32 0.0078125, %v63_v54 }
 0x138   :  { %v74_v57 = vadd.f32 1e-12, %v70_v55 }
 0x139   :  { %v65_v58 = vpop.xlane.xlu1 %64  ;;  %v67_v59 = vpop.xlane.xlu0 %66 }
 0x13a   :  { %1730 = vrsqrt.f32 %v74_v57  ;;  %v71_v60 = vmul.f32 0.0078125, %v65_v58  ;;  %v72_v61 = vmul.f32 0.0078125, %v67_v59 }
 0x13c   :  { %v75_v63 = vadd.f32 1e-12, %v71_v60  ;;  %v76_v0 = vadd.f32 1e-12, %v72_v61 }
 0x13d   :  { %v69_v1 = vpop.xlane.xlu1 %68 }
 0x13e   :  { %1732 = vrsqrt.f32 %v75_v63  ;;  %v73_v2 = vmul.f32 0.0078125, %v69_v1 }
 0x13f   :  { %1734 = vrsqrt.f32 %v76_v0 }
 0x140   :  { %v77_v4 = vadd.f32 1e-12, %v73_v2 }
 0x142   :  { %1736 = vrsqrt.f32 %v77_v4 }
 0x144   :  { %v1731_v8 = vpop.eup %1730 }
 0x145   :  { %v82_v9 = vmul.f32 %v1731_v8, %v1905_v14 }
 0x147   :  { %v90_v11 = vmul.f32 %v89_v7, %v82_v9 }
 0x148   :  { %v1733_v12 = vpop.eup %1732 }
 0x149   :  { %v1735_v13 = vpop.eup %1734  ;;  %v1942_v16 = vadd.f32 %v97_v10, %v90_v11  ;;  %v83_v17 = vmul.f32 %v1733_v12, %v1911_v21  ;;  %v239_v21 = vld [vmem:[#allocation2 + $0xb8] sm:$0xff] }
 0x14a   :  { %v84_v18 = vmul.f32 %v1735_v13, %v1907_v15  ;;  %v238_v15 = vld [vmem:[#allocation2 + $0xb0] sm:$0xff] }
 0x14b   :  { %1353 = vmatprep.mubr.f32.mxu0 %v1942_v16  ;;  %v91_v19 = vmul.f32 %v89_v7, %v83_v17  ;;  %v1585_v28 = vpack.c.bf16 %v239_v21, %v238_v15  ;;  %v250_v15 = vsub.s32 3, %v1925_v62 }
 0x14c   :  { %v1737_v20 = vpop.eup %1736  ;;  %v92_v23 = vmul.f32 %v89_v7, %v84_v18 }
 0x14d   :  { %v1947_v24 = vadd.f32 %v97_v10, %v91_v19  ;;  %v85_v14 = vmul.f32 %v1737_v20, %v1913_v22  ;;  %1586 = vmatpush3.bf16.msra.mxu1 %v1585_v28  ;;  %v1588_v22 = vpack.c.bf16 %v241_v30, %v240_v29  ;;  %v251_v28 = vrot.slane %v1933_v5, %v250_v15 }
 0x14e   :  { %v1950_v25 = vadd.f32 %v97_v10, %v92_v23  ;;  %1587 = vmatprep.subr.bf16.mxu1 %v1845_v47 }
 0x14f   :  { %1354 = vmatmul.mubr.f32.vlgmr.msra.gmra.mrb[0].mxu0 %v1947_v24  ;;  %v93_v26 = vmul.f32 %v89_v7, %v85_v14  ;;  %v1848_v14 = vmov 1966171168  }
 0x150   :  { %1356 = vmatprep.mubr.f32.mxu0 %v1950_v25 }
 0x151   :  { %v1954_v27 = vadd.f32 %v97_v10, %v93_v26  ;;  %1589 = vmatpush3.bf16.msra.mxu1 %v1588_v22  ;;  %v335_v26 = vunpack.c.l.s4 %v1848_v14  ;;  %v455_v14 = vld [vmem:[#allocation2 + $0x160] sm:$0xff] }
 0x152   :  { %1590 = vmatprep.subr.bf16.mxu1 %v1845_v47 }
 0x153   :  { %1357 = vmatmul.mubr.f32.gmra.mrb[2].mxu0 %v1954_v27  ;;  %v336_v21 = vunpack.c.0.s8 %v335_v26  ;;  %v456_v26 = vld [vmem:[#allocation2 + $0x168] sm:$0xff] }
 0x155   :  { %1592 = vmatpush3.bf16.msra.mxu1 %v1591_v33  ;;  %v1975_v29 = vsub.s32 %v336_v21, %v1925_v62  ;;  %v1623_v21 = vpack.c.bf16 %v456_v26, %v455_v14  ;;  %v597_v26 = vld [vmem:[#allocation2 + $0x1e0] sm:$0xff] }
 0x156   :  { %1593 = vmatprep.subr.bf16.mxu1 %v1845_v47 }
 0x159   :  { %1595 = vmatpush3.bf16.msra.mxu1 %v1594_v36 }
 0x15a   :  { %1596 = vmatprep.subr.bf16.mxu1 %v1845_v47 }
 0x15d   :  { %1598 = vmatpush3.bf16.msra.mxu1 %v1597_v39 }
 0x222   :  { %v1355_v43 = vpop.f32.mrb[0].mxu0 }
 0x223   :  { %v194_v44 = vadd.f32 %v1355_v43, %v121_v42  ;;  %v188_v45 = vpop.f32.mrb[1].mxu0 }
 0x224   :  { %v189_v46 = vadd.f32 %v188_v45, %v121_v42 }
 0x225   :  { %v213_v48 = vrot.slane %v194_v44, 4 }
 0x226   :  { %v207_v49 = vrot.slane %v189_v46, 4  ;;  %v1358_v50 = vpop.f32.mrb[2].mxu0 }
 0x227   :  { %v214_v51 = vadd.f32 %v213_v48, %v194_v44  ;;  %v204_v52 = vadd.f32 %v1358_v50, %v121_v42  ;;  %v198_v53 = vpop.f32.mrb[3].mxu0  ;;  %v444_v50 = vld [vmem:[#allocation2 + $0x108] sm:$0xff] }
 0x228   :  { %v208_v54 = vadd.f32 %v207_v49, %v189_v46  ;;  %v199_v55 = vadd.f32 %v198_v53, %v121_v42  ;;  %v443_v49 = vld [vmem:[#allocation2 + $0x100] sm:$0xff] }
 0x229   :  { %v215_v56 = vrot.slane %v214_v51, 2  ;;  %v225_v57 = vrot.slane %v204_v52, 4 }
 0x22a   :  { %v209_v58 = vrot.slane %v208_v54, 2  ;;  %v219_v59 = vrot.slane %v199_v55, 4 }
 0x22b   :  { %v216_v60 = vadd.f32 %v215_v56, %v214_v51  ;;  %v226_v61 = vadd.f32 %v225_v57, %v204_v52  ;;  %v1599_v51 = vpack.c.bf16 %v444_v50, %v443_v49  ;;  %v446_v52 = vld [vmem:[#allocation2 + $0x118] sm:$0xff]  ;;  %v428_v49 = vsub.s32 4, %v1925_v62 }
 0x22c   :  { %v210_v63 = vadd.f32 %v209_v58, %v208_v54  ;;  %v220_v0 = vadd.f32 %v219_v59, %v199_v55  ;;  %v447_v54 = vld [vmem:[#allocation2 + $0x120] sm:$0xff]  ;;  %v448_v55 = vld [vmem:[#allocation2 + $0x128] sm:$0xff]  ;;  %v436_v50 = vsub.s32 5, %v1925_v62 }
 0x22d   :  { %v217_v1 = vrot.slane %v216_v60, 1  ;;  %v227_v2 = vrot.slane %v226_v61, 2  ;;  %1600 = vmatprep.subr.bf16.mxu0 %v1599_v51 }
 0x22e   :  { %v211_v4 = vrot.slane %v210_v63, 1  ;;  %v221_v7 = vrot.slane %v220_v0, 2  ;;  %1602 = vmatpush3.bf16.msra.mxu0 %v1599_v51 }
 0x22f   :  { %v218_v8 = vadd.f32 %v217_v1, %v216_v60  ;;  %v228_v9 = vadd.f32 %v227_v2, %v226_v61 }
 0x230   :  { %v212_v10 = vadd.f32 %v211_v4, %v210_v63  ;;  %v222_v11 = vadd.f32 %v221_v7, %v220_v0 }
 0x231   :  { %v229_v12 = vrot.slane %v228_v9, 1 }
 0x232   :  { %v223_v13 = vrot.slane %v222_v11, 1  ;;  %v257_v17 = vsel %vm256_vm1, %v218_v8, %v212_v10  ;;  %v449_v10 = vld [vmem:[#allocation2 + $0x130] sm:$0xff] }
 0x233   :  { %v230_v19 = vadd.f32 %v229_v12, %v228_v9 }
 0x234   :  { %v224_v18 = vadd.f32 %v223_v13, %v222_v11  ;;  %v450_v11 = vld [vmem:[#allocation2 + $0x138] sm:$0xff]  ;;  %v451_v13 = vld [vmem:[#allocation2 + $0x140] sm:$0xff] }
 0x235   :  { %v1611_v12 = vpack.c.bf16 %v450_v11, %v449_v10  ;;  %v590_v10 = vld [vmem:[#allocation2 + $0x1a8] sm:$0xff] }
 0x236   :  { %v259_v20 = vsel %vm258_vm2, %v224_v18, %v257_v17  ;;  %v452_v17 = vld [vmem:[#allocation2 + $0x148] sm:$0xff] }
 0x237   :  { %v261_v23 = vsel %vm260_vm3, %v230_v19, %v259_v20  ;;  %v1615_v18 = vpack.c.bf16 %v452_v17, %v451_v13  ;;  %v453_v19 = vld [vmem:[#allocation2 + $0x150] sm:$0xff]  ;;  %v454_v20 = vld [vmem:[#allocation2 + $0x158] sm:$0xff]  ;;  %v593_v17 = vld [vmem:[#allocation2 + $0x1c0] sm:$0xff] }
 0x238   :  { %1392 = vmatmul.mubr.f32.vlgmr.msra.gmra.mrb[0].mxu1 %v261_v23  ;;  %v1619_v23 = vpack.c.bf16 %v454_v20, %v453_v19  ;;  %v595_v19 = vld [vmem:[#allocation2 + $0x1d0] sm:$0xff] }
 0x30b   :  { %v329_v30 = vpop.f32.mrb[0].mxu1 }
 0x30c   :  { %v330_v22 = vadd.f32 %v329_v30, %v251_v28  ;;  %v1393_v31 = vpop.f32.mrb[1].mxu1  ;;  %v457_v28 = vld [vmem:[#allocation2 + $0x170] sm:$0xff]  ;;  %v458_v30 = vld [vmem:[#allocation2 + $0x178] sm:$0xff] }
 0x30d   :  { %v585_v31 = vld [vmem:[#allocation2 + $0x180] sm:$0xff] }
 0x30e   :  { %v340_v32 = vrot.slane %v330_v22, %v1975_v29  ;;  %v1627_v22 = vpack.c.bf16 %v458_v30, %v457_v28  ;;  %v599_v30 = vld [vmem:[#allocation2 + $0x1f0] sm:$0xff] }
 0x310   :  { %v341_v33 = vcombine.high %v340_v32, %v340_v32  ;;  %v348_v34 = vrot.slane %v340_v32, %v1975_v29  ;;  %v586_v32 = vld [vmem:[#allocation2 + $0x188] sm:$0xff] }
 0x312   :  { %v361_v35 = vrot.slane %v348_v34, %v1928_v3  ;;  %v355_v36 = vrot.slane %v341_v33, %v1975_v29  ;;  %v356_v37 = vcombine.high %v348_v34, %v348_v34  ;;  %v1631_v33 = vpack.c.bf16 %v586_v32, %v585_v31 }
 0x313   :  { %v461_v32 = vsub.s32 6, %v1925_v62 }
 0x314   :  { %v378_v38 = vadd.f32 %v361_v35, %v1942_v16  ;;  %v365_v39 = vrot.slane %v355_v36, %v1928_v3  ;;  %v369_v42 = vrot.slane %v356_v37, %v1928_v3  ;;  %v357_v43 = vcombine.high %v355_v36, %v355_v36  ;;  %v445_v16 = vld [vmem:[#allocation2 + $0x110] sm:$0xff]  ;;  %1632 = vmatprep.subr.bf16.mxu1 %v1631_v33 }
 0x315   :  { %v1603_v53 = vpack.c.bf16 %v446_v52, %v445_v16  ;;  %1634 = vmatpush3.bf16.msra.mxu1 %v1631_v33  ;;  %v429_v16 = vrot.slane %v1933_v5, %v428_v49  ;;  %v462_v33 = vrot.slane %v1933_v5, %v461_v32 }
 0x316   :  { %382 = vadd.xlane.f32.xlu0 %v378_v38  ;;  %v379_v44 = vadd.f32 %v365_v39, %v1947_v24  ;;  %v373_v45 = vrot.slane %v357_v43, %v1928_v3  ;;  %v380_v46 = vadd.f32 %v369_v42, %v1950_v25  ;;  %v1607_v24 = vpack.c.bf16 %v448_v55, %v447_v54 }
 0x317   :  { %1604 = vmatprep.subr.bf16.mxu0 %v1603_v53 }
 0x318   :  { %384 = vadd.xlane.f32.xlu1 %v379_v44  ;;  %v381_v48 = vadd.f32 %v373_v45, %v1954_v27  ;;  %1606 = vmatpush3.bf16.msra.mxu0 %v1603_v53  ;;  %v437_v53 = vrot.slane %v1933_v5, %v436_v50 }
 0x319   :  { %1608 = vmatprep.subr.bf16.mxu0 %v1607_v24 }
 0x31a   :  { %386 = vadd.xlane.f32.xlu0 %v380_v46 }
 0x31c   :  { %388 = vadd.xlane.f32.xlu1 %v381_v48  ;;  %1610 = vmatpush3.bf16.msra.mxu0 %v1607_v24 }
 0x31d   :  { %1612 = vmatprep.subr.bf16.mxu0 %v1611_v12 }
 0x320   :  { %1614 = vmatpush3.bf16.msra.mxu0 %v1611_v12  ;;  %v592_v12 = vld [vmem:[#allocation2 + $0x1b8] sm:$0xff] }
 0x321   :  { %1616 = vmatprep.subr.bf16.mxu0 %v1615_v18 }
 0x324   :  { %1618 = vmatpush3.bf16.msra.mxu0 %v1615_v18  ;;  %v594_v18 = vld [vmem:[#allocation2 + $0x1c8] sm:$0xff] }
 0x325   :  { %1620 = vmatprep.subr.bf16.mxu0 %v1619_v23  ;;  %v1647_v20 = vpack.c.bf16 %v594_v18, %v593_v17 }
 0x328   :  { %1622 = vmatpush3.bf16.msra.mxu0 %v1619_v23  ;;  %v596_v23 = vld [vmem:[#allocation2 + $0x1d8] sm:$0xff] }
 0x329   :  { %1624 = vmatprep.subr.bf16.mxu0 %v1623_v21  ;;  %v1651_v14 = vpack.c.bf16 %v596_v23, %v595_v19 }
 0x32c   :  { %1626 = vmatpush3.bf16.msra.mxu0 %v1623_v21  ;;  %v598_v21 = vld [vmem:[#allocation2 + $0x1e8] sm:$0xff] }
 0x32d   :  { %1628 = vmatprep.subr.bf16.mxu0 %v1627_v22  ;;  %v1655_v28 = vpack.c.bf16 %v598_v21, %v597_v26  ;;  %v1849_v21 = vmov 0  }
 0x32e   :  { %1729 = vset.pattern.permute.xlu1 %v1849_v21  ;;  %1728 = vset.pattern.permute.xlu0 %v1849_v21  ;;  %v940_v21 = vld [vmem:[#allocation2 + $0x298] sm:$0xff] }
 0x330   :  { %1630 = vmatpush3.bf16.msra.mxu0 %v1627_v22  ;;  %v600_v22 = vld [vmem:[#allocation2 + $0x1f8] sm:$0xff] }
 0x331   :  { %v1659_v31 = vpack.c.bf16 %v600_v22, %v599_v30 }
 0x3a3   :  { %v383_v25 = vpop.xlane.xlu0 %382 }
 0x3a4   :  { %v390_v56 = vmul.f32 0.0078125, %v383_v25 }
 0x3a5   :  { %v385_v57 = vpop.xlane.xlu1 %384 }
 0x3a6   :  { %v1988_v27 = vsub.f32 %v378_v38, %v390_v56  ;;  %v391_v58 = vmul.f32 0.0078125, %v385_v57 }
 0x3a7   :  { %v387_v59 = vpop.xlane.xlu0 %386 }
 0x3a8   :  { %v1990_v60 = vsub.f32 %v379_v44, %v391_v58  ;;  %v392_v61 = vmul.f32 0.0078125, %v387_v59  ;;  %v398_v63 = vmul.f32 %v1988_v27, %v1988_v27 }
 0x3a9   :  { %v389_v0 = vpop.xlane.xlu1 %388 }
 0x3aa   :  { %v1994_v1 = vsub.f32 %v380_v46, %v392_v61  ;;  %v393_v2 = vmul.f32 0.0078125, %v389_v0  ;;  %402 = vadd.xlane.f32.xlu0 %v398_v63  ;;  %v399_v4 = vmul.f32 %v1990_v60, %v1990_v60 }
 0x3ac   :  { %v1998_v7 = vsub.f32 %v381_v48, %v393_v2  ;;  %404 = vadd.xlane.f32.xlu1 %v399_v4  ;;  %v400_v8 = vmul.f32 %v1994_v1, %v1994_v1  ;;  %v588_v4 = vld [vmem:[#allocation2 + $0x198] sm:$0xff] }
 0x3ae   :  { %406 = vadd.xlane.f32.xlu0 %v400_v8  ;;  %v401_v9 = vmul.f32 %v1998_v7, %v1998_v7 }
 0x3b0   :  { %408 = vadd.xlane.f32.xlu1 %v401_v9  ;;  %v589_v9 = vld [vmem:[#allocation2 + $0x1a0] sm:$0xff] }
 0x3b1   :  { %v1639_v11 = vpack.c.bf16 %v590_v10, %v589_v9 }
 0x437   :  { %v403_v34 = vpop.xlane.xlu0 %402 }
 0x438   :  { %v410_v35 = vmul.f32 0.0078125, %v403_v34 }
 0x439   :  { %v405_v36 = vpop.xlane.xlu1 %404 }
 0x43a   :  { %v414_v37 = vadd.f32 1e-08, %v410_v35  ;;  %v411_v38 = vmul.f32 0.0078125, %v405_v36 }
 0x43b   :  { %v407_v39 = vpop.xlane.xlu0 %406 }
 0x43c   :  { %1738 = vrsqrt.f32 %v414_v37  ;;  %v415_v42 = vadd.f32 1e-08, %v411_v38  ;;  %v412_v43 = vmul.f32 0.0078125, %v407_v39 }
 0x43d   :  { %v409_v44 = vpop.xlane.xlu1 %408 }
 0x43e   :  { %1740 = vrsqrt.f32 %v415_v42  ;;  %v416_v45 = vadd.f32 1e-08, %v412_v43  ;;  %v413_v46 = vmul.f32 0.0078125, %v409_v44 }
 0x440   :  { %1742 = vrsqrt.f32 %v416_v45  ;;  %v417_v48 = vadd.f32 1e-08, %v413_v46 }
 0x442   :  { %1744 = vrsqrt.f32 %v417_v48 }
 0x446   :  { %v1739_v51 = vpop.eup %1738 }
 0x447   :  { %v422_v52 = vmul.f32 %v1739_v51, %v1988_v27 }
 0x448   :  { %v1741_v54 = vpop.eup %1740 }
 0x449   :  { %v423_v55 = vmul.f32 %v1741_v54, %v1990_v60  ;;  %v430_v24 = vmul.f32 %v429_v16, %v422_v52 }
 0x44a   :  { %v1743_v25 = vpop.eup %1742 }
 0x44b   :  { %v2010_v56 = vadd.f32 %v437_v53, %v430_v24  ;;  %v431_v57 = vmul.f32 %v429_v16, %v423_v55  ;;  %v424_v58 = vmul.f32 %v1743_v25, %v1994_v1  ;;  %v587_v1 = vld [vmem:[#allocation2 + $0x190] sm:$0xff] }
 0x44c   :  { %v1745_v59 = vpop.eup %1744  ;;  %v1635_v8 = vpack.c.bf16 %v588_v4, %v587_v1 }
 0x44d   :  { %1426 = vmatprep.mubr.f32.mxu0 %v2010_v56  ;;  %v2014_v61 = vadd.f32 %v437_v53, %v431_v57  ;;  %v432_v63 = vmul.f32 %v429_v16, %v424_v58  ;;  %v425_v27 = vmul.f32 %v1745_v59, %v1998_v7  ;;  %v591_v7 = vld [vmem:[#allocation2 + $0x1b0] sm:$0xff] }
 0x44e   :  { %1636 = vmatprep.subr.bf16.mxu1 %v1635_v8  ;;  %v1643_v13 = vpack.c.bf16 %v592_v12, %v591_v7 }
 0x44f   :  { %1427 = vmatmul.mubr.f32.vlgmr.msra.gmra.mrb[4].mxu0 %v2014_v61  ;;  %v2018_v0 = vadd.f32 %v437_v53, %v432_v63  ;;  %v433_v60 = vmul.f32 %v429_v16, %v425_v27  ;;  %1638 = vmatpush3.bf16.msra.mxu1 %v1635_v8 }
 0x450   :  { %1640 = vmatprep.subr.bf16.mxu1 %v1639_v11 }
 0x451   :  { %1429 = vmatprep.mubr.f32.mxu0 %v2018_v0  ;;  %v2021_v2 = vadd.f32 %v437_v53, %v433_v60 }
 0x453   :  { %1430 = vmatmul.mubr.f32.gmra.mrb[6].mxu0 %v2021_v2  ;;  %1642 = vmatpush3.bf16.msra.mxu1 %v1639_v11 }
 0x454   :  { %1644 = vmatprep.subr.bf16.mxu1 %v1643_v13 }
 0x457   :  { %1646 = vmatpush3.bf16.msra.mxu1 %v1643_v13 }
 0x458   :  { %1648 = vmatprep.subr.bf16.mxu1 %v1647_v20 }
 0x45b   :  { %1650 = vmatpush3.bf16.msra.mxu1 %v1647_v20 }
 0x45c   :  { %1652 = vmatprep.subr.bf16.mxu1 %v1651_v14 }
 0x45f   :  { %1654 = vmatpush3.bf16.msra.mxu1 %v1651_v14 }
 0x460   :  { %1656 = vmatprep.subr.bf16.mxu1 %v1655_v28 }
 0x463   :  { %1658 = vmatpush3.bf16.msra.mxu1 %v1655_v28  ;;  %v603_v28 = vsub.s32 7, %v1925_v62  ;;  %v1124_v62 = vld [vmem:[%s2157_s2 + $0x8] sm:$0xff] }
 0x464   :  { %1660 = vmatprep.subr.bf16.mxu1 %v1659_v31 }
 0x465   :  { %v604_v30 = vrot.slane %v1933_v5, %v603_v28  ;;  %v756_v5 = vld [vmem:[%s2156_s1 + $0x2] sm:$0x1] }
 0x467   :  { %1662 = vmatpush3.bf16.msra.mxu1 %v1659_v31 }
 0x468   :  { %1695 = vmatprep.subr.bf16.mxu1 %v1845_v47 }
 0x522   :  { %v1428_v34 = vpop.f32.mrb[4].mxu0 }
 0x523   :  { %v535_v35 = vadd.f32 %v1428_v34, %v462_v33  ;;  %v529_v36 = vpop.f32.mrb[5].mxu0 }
 0x524   :  { %v530_v37 = vadd.f32 %v529_v36, %v462_v33 }
 0x525   :  { %v553_v38 = vmul.f32 0.044715, %v535_v35  ;;  %v549_v11 = vmul.f32 0.5, %v535_v35 }
 0x526   :  { %v552_v39 = vmul.f32 0.044715, %v530_v37  ;;  %v1431_v42 = vpop.f32.mrb[6].mxu0  ;;  %v548_v9 = vmul.f32 0.5, %v530_v37 }
 0x527   :  { %v557_v43 = vmul.f32 %v553_v38, %v535_v35  ;;  %v545_v44 = vadd.f32 %v1431_v42, %v462_v33  ;;  %v539_v45 = vpop.f32.mrb[7].mxu0 }
 0x528   :  { %v556_v46 = vmul.f32 %v552_v39, %v530_v37  ;;  %v540_v48 = vadd.f32 %v539_v45, %v462_v33 }
 0x529   :  { %v561_v49 = vmul.f32 %v557_v43, %v535_v35  ;;  %v555_v50 = vmul.f32 0.044715, %v545_v44  ;;  %v551_v23 = vmul.f32 0.5, %v545_v44 }
 0x52a   :  { %v554_v16 = vmul.f32 0.044715, %v540_v48  ;;  %v560_v51 = vmul.f32 %v556_v46, %v530_v37  ;;  %v550_v19 = vmul.f32 0.5, %v540_v48 }
 0x52b   :  { %v565_v52 = vadd.f32 %v561_v49, %v535_v35  ;;  %v559_v53 = vmul.f32 %v555_v50, %v545_v44 }
 0x52c   :  { %v558_v54 = vmul.f32 %v554_v16, %v540_v48  ;;  %v564_v55 = vadd.f32 %v560_v51, %v530_v37 }
 0x52d   :  { %v569_v24 = vmul.f32 0.7978846, %v565_v52  ;;  %v563_v25 = vmul.f32 %v559_v53, %v545_v44 }
 0x52e   :  { %v568_v57 = vmul.f32 0.7978846, %v564_v55  ;;  %v562_v58 = vmul.f32 %v558_v54, %v540_v48 }
 0x52f   :  { %1746 = vtanh.f32 %v569_v24  ;;  %v567_v59 = vadd.f32 %v563_v25, %v545_v44  ;;  %v831_v24 = vld [vmem:[#allocation2 + $0x200] sm:$0xff]  ;;  %v832_v25 = vld [vmem:[#allocation2 + $0x208] sm:$0xff] }
 0x530   :  { %1748 = vtanh.f32 %v568_v57  ;;  %v566_v63 = vadd.f32 %v562_v58, %v540_v48  ;;  %v1663_v57 = vpack.c.bf16 %v832_v25, %v831_v24  ;;  %v833_v58 = vld [vmem:[#allocation2 + $0x210] sm:$0xff] }
 0x531   :  { %v571_v27 = vmul.f32 0.7978846, %v567_v59  ;;  %v834_v59 = vld [vmem:[#allocation2 + $0x218] sm:$0xff] }
 0x532   :  { %v570_v60 = vmul.f32 0.7978846, %v566_v63  ;;  %1664 = vmatprep.subr.bf16.mxu0 %v1663_v57  ;;  %v1667_v63 = vpack.c.bf16 %v834_v59, %v833_v58 }
 0x533   :  { %1750 = vtanh.f32 %v571_v27  ;;  %1666 = vmatpush3.bf16.msra.mxu0 %v1663_v57  ;;  %v755_v27 = vld [vmem:[%s2156_s1 + $0x1] sm:$0x1] }
 0x534   :  { %1752 = vtanh.f32 %v570_v60  ;;  %1668 = vmatprep.subr.bf16.mxu0 %v1667_v63  ;;  %v835_v60 = vld [vmem:[#allocation2 + $0x220] sm:$0xff] }
 0x537   :  { %1670 = vmatpush3.bf16.msra.mxu0 %v1667_v63 }
 0x539   :  { %v1747_v1 = vpop.eup %1746 }
 0x53a   :  { %v1749_v4 = vpop.eup %1748  ;;  %v577_v8 = vadd.f32 1.0, %v1747_v1  ;;  %v836_v1 = vld [vmem:[#allocation2 + $0x228] sm:$0xff] }
 0x53b   :  { %v576_v10 = vadd.f32 1.0, %v1749_v4  ;;  %v1671_v4 = vpack.c.bf16 %v836_v1, %v835_v60  ;;  %v2073_v60 = vld [vmem:[%s2159_s4 + $0x8] sm:$0xf] }
 0x53c   :  { %v581_v17 = vmul.f32 %v577_v8, %v549_v11  ;;  %v757_v8 = vld [vmem:[%s2156_s1 + $0x3] sm:$0x1] }
 0x53d   :  { %v1751_v7 = vpop.eup %1750  ;;  %v580_v12 = vmul.f32 %v576_v10, %v548_v9  ;;  %1672 = vmatprep.subr.bf16.mxu0 %v1671_v4  ;;  %v837_v9 = vld [vmem:[#allocation2 + $0x230] sm:$0xff]  ;;  %v838_v10 = vld [vmem:[#allocation2 + $0x238] sm:$0xff] }
 0x53e   :  { %v1753_v13 = vpop.eup %1752  ;;  %v579_v18 = vadd.f32 1.0, %v1751_v7  ;;  %1674 = vmatpush3.bf16.msra.mxu0 %v1671_v4  ;;  %v1675_v11 = vpack.c.bf16 %v838_v10, %v837_v9  ;;  %v839_v7 = vld [vmem:[#allocation2 + $0x240] sm:$0xff]  ;;  %v741_v4 = vrot.slane %v2073_v60, %v1928_v3  ;;  %v749_v10 = vrot.slane %v2073_v60, %v96_v6 }
 0x53f   :  { %1464 = vmatprep.mubr.f32.mxu1 %v580_v12  ;;  %v578_v20 = vadd.f32 1.0, %v1753_v13  ;;  %v840_v12 = vld [vmem:[#allocation2 + $0x248] sm:$0xff]  ;;  %v937_v13 = vld [vmem:[#allocation2 + $0x280] sm:$0xff] }
 0x540   :  { %1465 = vmatmul.mubr.f32.vlgmr.msra.gmra.mrb[2].mxu1 %v581_v17  ;;  %v583_v26 = vmul.f32 %v579_v18, %v551_v23  ;;  %1676 = vmatprep.subr.bf16.mxu0 %v1675_v11  ;;  %v1679_v17 = vpack.c.bf16 %v840_v12, %v839_v7  ;;  %v938_v18 = vld [vmem:[#allocation2 + $0x288] sm:$0xff]  ;;  %v842_v23 = vld [vmem:[#allocation2 + $0x258] sm:$0xff] }
 0x541   :  { %v582_v14 = vmul.f32 %v578_v20, %v550_v19  ;;  %v1696_v19 = vpack.c.bf16 %v938_v18, %v937_v13  ;;  %v841_v20 = vld [vmem:[#allocation2 + $0x250] sm:$0xff] }
 0x542   :  { %1678 = vmatpush3.bf16.msra.mxu0 %v1675_v11 }
 0x543   :  { %1467 = vmatprep.mubr.f32.mxu1 %v582_v14  ;;  %1680 = vmatprep.subr.bf16.mxu0 %v1679_v17  ;;  %v939_v14 = vld [vmem:[#allocation2 + $0x290] sm:$0xff] }
 0x544   :  { %1468 = vmatmul.mubr.f32.gmra.mrb[4].mxu1 %v583_v26  ;;  %v1683_v26 = vpack.c.bf16 %v842_v23, %v841_v20  ;;  %v1699_v28 = vpack.c.bf16 %v940_v21, %v939_v14 }
 0x545   :  { %1540 = vmatprep.mubr.msk.f32.mxu1 %vm1846_vm0, %v1847_v40  ;;  %1697 = vmatpush3.bf16.msra.mxu1 %v1696_v19 }
 0x546   :  { %1682 = vmatpush3.bf16.msra.mxu0 %v1679_v17  ;;  %1698 = vmatprep.subr.bf16.mxu1 %v1845_v47 }
 0x547   :  { %1684 = vmatprep.subr.bf16.mxu0 %v1683_v26 }
 0x549   :  { %1700 = vmatpush3.bf16.msra.mxu1 %v1699_v28 }
 0x54a   :  { %1686 = vmatpush3.bf16.msra.mxu0 %v1683_v26  ;;  %1701 = vmatprep.subr.bf16.mxu1 %v1845_v47 }
 0x613   :  { %v1466_v22 = vpop.f32.mrb[2].mxu1 }
 0x614   :  { %v677_v31 = vadd.f32 %v1466_v22, %v604_v30  ;;  %v671_v32 = vpop.f32.mrb[3].mxu1  ;;  %v844_v22 = vld [vmem:[#allocation2 + $0x268] sm:$0xff] }
 0x615   :  { %v672_v33 = vadd.f32 %v671_v32, %v604_v30 }
 0x616   :  { %v691_v34 = vadd.f32 %v677_v31, %v2014_v61  ;;  %v754_v61 = vld [vmem:[%s2156_s1] sm:$0x1] }
 0x617   :  { %v1469_v35 = vpop.f32.mrb[4].mxu1  ;;  %v690_v38 = vadd.f32 %v672_v33, %v2010_v56  ;;  %v941_v31 = vld [vmem:[#allocation2 + $0x2a0] sm:$0xff]  ;;  %v942_v33 = vld [vmem:[#allocation2 + $0x2a8] sm:$0xff] }
 0x618   :  { %696 = vadd.xlane.f32.xlu0 %v691_v34  ;;  %v681_v36 = vpop.f32.mrb[5].mxu1  ;;  %v687_v40 = vadd.f32 %v1469_v35, %v604_v30  ;;  %v845_v35 = vld [vmem:[#allocation2 + $0x270] sm:$0xff] }
 0x619   :  { %v682_v37 = vadd.f32 %v681_v36, %v604_v30  ;;  %v843_v30 = vld [vmem:[#allocation2 + $0x260] sm:$0xff]  ;;  %v846_v36 = vld [vmem:[#allocation2 + $0x278] sm:$0xff] }
 0x61a   :  { %v693_v42 = vadd.f32 %v687_v40, %v2021_v2  ;;  %v1687_v32 = vpack.c.bf16 %v844_v22, %v843_v30  ;;  %v944_v40 = vld [vmem:[#allocation2 + $0x2b8] sm:$0xff] }
 0x61b   :  { %v692_v39 = vadd.f32 %v682_v37, %v2018_v0  ;;  %v943_v37 = vld [vmem:[#allocation2 + $0x2b0] sm:$0xff] }
 0x61c   :  { %694 = vadd.xlane.f32.xlu0 %v690_v38  ;;  %1688 = vmatprep.subr.bf16.mxu0 %v1687_v32 }
 0x61d   :  { %698 = vadd.xlane.f32.xlu1 %v692_v39  ;;  %1690 = vmatpush3.bf16.msra.mxu0 %v1687_v32 }
 0x621   :  { %700 = vadd.xlane.f32.xlu1 %v693_v42 }
 0x632   :  { %802 = vperm.xlu1 %1729, %v756_v5   ;;  %v946_v5 = vld [vmem:[#allocation2 + $0x2c8] sm:$0xff] }
 0x636   :  { %784 = vperm.xlu1 %1729, %v754_v61  }
 0x6a5   :  { %v697_v43 = vpop.xlane.xlu0 %696 }
 0x6a6   :  { %v703_v56 = vmul.f32 0.0078125, %v697_v43  ;;  %v947_v43 = vld [vmem:[#allocation2 + $0x2d0] sm:$0xff] }
 0x6a8   :  { %v2041_v44 = vsub.f32 %v691_v34, %v703_v56  ;;  %v1702_v34 = vpack.c.bf16 %v942_v33, %v941_v31  ;;  %v948_v56 = vld [vmem:[#allocation2 + $0x2d8] sm:$0xff] }
 0x6a9   :  { %v695_v0 = vpop.xlane.xlu0 %694 }
 0x6aa   :  { %v702_v45 = vmul.f32 0.0078125, %v695_v0  ;;  %v699_v46 = vpop.xlane.xlu1 %698  ;;  %v711_v2 = vmul.f32 %v2041_v44, %v2041_v44  ;;  %1703 = vmatpush3.bf16.msra.mxu1 %v1702_v34  ;;  %v1711_v0 = vpack.c.bf16 %v948_v56, %v947_v43 }
 0x6ab   :  { %v704_v16 = vmul.f32 0.0078125, %v699_v46  ;;  %1704 = vmatprep.subr.bf16.mxu1 %v1845_v47  ;;  %v950_v46 = vld [vmem:[#allocation2 + $0x2e8] sm:$0xff] }
 0x6ac   :  { %v2045_v48 = vsub.f32 %v690_v38, %v702_v45  ;;  %716 = vadd.xlane.f32.xlu0 %v711_v2  ;;  %v1691_v38 = vpack.c.bf16 %v846_v36, %v845_v35  ;;  %v949_v45 = vld [vmem:[#allocation2 + $0x2e0] sm:$0xff] }
 0x6ad   :  { %v2051_v53 = vsub.f32 %v692_v39, %v704_v16  ;;  %v1705_v39 = vpack.c.bf16 %v944_v40, %v943_v37  ;;  %v1714_v2 = vpack.c.bf16 %v950_v46, %v949_v45 }
 0x6ae   :  { %v701_v49 = vpop.xlane.xlu1 %700  ;;  %v710_v50 = vmul.f32 %v2045_v48, %v2045_v48  ;;  %1692 = vmatprep.subr.bf16.mxu0 %v1691_v38 }
 0x6af   :  { %v705_v51 = vmul.f32 0.0078125, %v701_v49  ;;  %v712_v55 = vmul.f32 %v2051_v53, %v2051_v53  ;;  %1706 = vmatpush3.bf16.msra.mxu1 %v1705_v39  ;;  %1694 = vmatpush3.bf16.msra.mxu0 %v1691_v38  ;;  %v951_v49 = vld [vmem:[#allocation2 + $0x2f0] sm:$0xff] }
 0x6b0   :  { %714 = vadd.xlane.f32.xlu0 %v710_v50  ;;  %1707 = vmatprep.subr.bf16.mxu1 %v1845_v47  ;;  %v952_v50 = vld [vmem:[#allocation2 + $0x2f8] sm:$0xff] }
 0x6b1   :  { %v2049_v52 = vsub.f32 %v693_v42, %v705_v51  ;;  %v945_v42 = vld [vmem:[#allocation2 + $0x2c0] sm:$0xff]  ;;  %v1717_v16 = vpack.c.bf16 %v952_v50, %v951_v49 }
 0x6b2   :  { %v1708_v61 = vpack.c.bf16 %v946_v5, %v945_v42  ;;  %v803_v51 = vpop.permute.xlu1 %802 }
 0x6b3   :  { %v713_v54 = vmul.f32 %v2049_v52, %v2049_v52  ;;  %v808_v31 = vrot.slane %v803_v51, %v1928_v3 }
 0x6b4   :  { %1709 = vmatpush3.bf16.msra.mxu1 %v1708_v61 }
 0x6b5   :  { %720 = vadd.xlane.f32.xlu1 %v713_v54  ;;  %1710 = vmatprep.subr.bf16.mxu1 %v1845_v47 }
 0x6b6   :  { %v785_v57 = vpop.permute.xlu1 %784 }
 0x6b7   :  { %v790_v34 = vrot.slane %v785_v57, %v1928_v3 }
 0x6b8   :  { %1712 = vmatpush3.bf16.msra.mxu1 %v1711_v0 }
 0x6b9   :  { %718 = vadd.xlane.f32.xlu1 %v712_v55  ;;  %1713 = vmatprep.subr.bf16.mxu1 %v1845_v47 }
 0x6bc   :  { %1715 = vmatpush3.bf16.msra.mxu1 %v1714_v2 }
 0x6bd   :  { %1716 = vmatprep.subr.bf16.mxu1 %v1845_v47 }
 0x6c0   :  { %1718 = vmatpush3.bf16.msra.mxu1 %v1717_v16 }
 0x6c6   :  { %793 = vperm.xlu0 %1728, %v755_v27  }
 0x6ca   :  { %811 = vperm.xlu1 %1729, %v757_v8  }
 0x739   :  { %v717_v54 = vpop.xlane.xlu0 %716 }
 0x73a   :  { %v723_v55 = vmul.f32 0.0078125, %v717_v54 }
 0x73c   :  { %v727_v24 = vadd.f32 1e-08, %v723_v55 }
 0x73d   :  { %v715_v25 = vpop.xlane.xlu0 %714 }
 0x73e   :  { %1754 = vrsqrt.f32 %v727_v24  ;;  %v722_v58 = vmul.f32 0.0078125, %v715_v25 }
 0x740   :  { %v726_v59 = vadd.f32 1e-08, %v722_v58 }
 0x742   :  { %1756 = vrsqrt.f32 %v726_v59  ;;  %v721_v63 = vpop.xlane.xlu1 %720 }
 0x743   :  { %v725_v27 = vmul.f32 0.0078125, %v721_v63 }
 0x745   :  { %v729_v1 = vadd.f32 1e-08, %v725_v27  ;;  %v794_v21 = vpop.permute.xlu0 %793 }
 0x746   :  { %v719_v47 = vpop.xlane.xlu1 %718 }
 0x747   :  { %1758 = vrsqrt.f32 %v729_v1  ;;  %v724_v8 = vmul.f32 0.0078125, %v719_v47 }
 0x748   :  { %v1755_v9 = vpop.eup %1754 }
 0x749   :  { %v735_v11 = vmul.f32 %v1755_v9, %v2041_v44  ;;  %v728_v7 = vadd.f32 1e-08, %v724_v8 }
 0x74a   :  { %v812_v30 = vpop.permute.xlu1 %811 }
 0x74b   :  { %v743_v12 = vmul.f32 %v741_v4, %v735_v11  ;;  %1760 = vrsqrt.f32 %v728_v7  ;;  %v817_v36 = vrot.slane %v812_v30, %v1928_v3 }
 0x74c   :  { %v1757_v13 = vpop.eup %1756 }
 0x74d   :  { %v2081_v17 = vadd.f32 %v749_v10, %v743_v12  ;;  %v734_v18 = vmul.f32 %v1757_v13, %v2045_v48  ;;  %v799_v48 = vrot.slane %v794_v21, %v1928_v3 }
 0x74f   :  { %v742_v19 = vmul.f32 %v741_v4, %v734_v18  ;;  %v764_v20 = vrot.slane %v2081_v17, 4 }
 0x751   :  { %v1759_v23 = vpop.eup %1758  ;;  %v2085_v14 = vadd.f32 %v749_v10, %v742_v19  ;;  %v765_v26 = vadd.f32 %v764_v20, %v2081_v17 }
 0x752   :  { %v737_v6 = vmul.f32 %v1759_v23, %v2049_v52 }
 0x753   :  { %1762 = vtanh.f32 %v2085_v14  ;;  %v758_v44 = vrot.slane %v2085_v14, 4  ;;  %v766_v32 = vrot.slane %v765_v26, 2 }
 0x754   :  { %1764 = vtanh.f32 %v2081_v17  ;;  %v745_v28 = vmul.f32 %v741_v4, %v737_v6 }
 0x755   :  { %v1761_v22 = vpop.eup %1760  ;;  %v759_v33 = vadd.f32 %v758_v44, %v2085_v14  ;;  %1766 = vrcp.f32 %v799_v48  ;;  %v767_v39 = vadd.f32 %v766_v32, %v765_v26  ;;  %v850_v44 = vrot.slane %v2073_v60, %v120_v41 }
 0x756   :  { %v2096_v35 = vadd.f32 %v749_v10, %v745_v28  ;;  %v736_v52 = vmul.f32 %v1761_v22, %v2051_v53  ;;  %1768 = vrcp.f32 %v808_v31 }
 0x757   :  { %v760_v37 = vrot.slane %v759_v33, 2  ;;  %1770 = vrcp.f32 %v790_v34  ;;  %v768_v0 = vrot.slane %v767_v39, 1 }
 0x758   :  { %v744_v38 = vmul.f32 %v741_v4, %v736_v52  ;;  %v776_v40 = vrot.slane %v2096_v35, 4  ;;  %1772 = vrcp.f32 %v817_v36 }
 0x759   :  { %v761_v61 = vadd.f32 %v760_v37, %v759_v33  ;;  %v769_v51 = vadd.f32 %v768_v0, %v767_v39 }
 0x75a   :  { %v2101_v42 = vadd.f32 %v749_v10, %v744_v38  ;;  %v777_v5 = vadd.f32 %v776_v40, %v2096_v35 }
 0x75b   :  { %v762_v49 = vrot.slane %v761_v61, 1 }
 0x75c   :  { %1774 = vtanh.f32 %v2101_v42  ;;  %v770_v53 = vrot.slane %v2101_v42, 4  ;;  %v778_v43 = vrot.slane %v777_v5, 2 }
 0x75d   :  { %v1763_v56 = vpop.eup %1762  ;;  %1776 = vtanh.f32 %v2096_v35  ;;  %v763_v25 = vadd.f32 %v762_v49, %v761_v61 }
 0x75e   :  { %v1765_v45 = vpop.eup %1764  ;;  %1502 = vmatprep.mubr.f32.mxu0 %v1763_v56  ;;  %v771_v46 = vadd.f32 %v770_v53, %v2101_v42  ;;  %v779_v2 = vadd.f32 %v778_v43, %v777_v5 }
 0x75f   :  { %1503 = vmatmul.mubr.f32.vlgmr.msra.gmra.mrb[8].mxu0 %v1765_v45  ;;  %v1767_v54 = vpop.eup %1766 }
 0x760   :  { %v772_v50 = vrot.slane %v771_v46, 2  ;;  %v780_v16 = vrot.slane %v779_v2, 1  ;;  %v1769_v24 = vpop.eup %1768  ;;  %v821_v27 = vmul.f32 %v1767_v54, %v769_v51 }
 0x761   :  { %v1771_v58 = vpop.eup %1770 }
 0x762   :  { %v773_v55 = vadd.f32 %v772_v50, %v771_v46  ;;  %v781_v57 = vadd.f32 %v780_v16, %v779_v2  ;;  %v1773_v63 = vpop.eup %1772  ;;  %v819_v8 = vmul.f32 %v1771_v58, %v763_v25  ;;  %v957_v11 = vrot.slane %v821_v27, 7 }
 0x764   :  { %v774_v59 = vrot.slane %v773_v55, 1  ;;  %v825_v9 = vmul.f32 %v1773_v63, %v781_v57  ;;  %v958_v12 = vsel %vm256_vm1, %v957_v11, %v819_v8  ;;  %v1125_v8 = vld [vmem:[%s2157_s2 + $0x10] sm:$0xff] }
 0x766   :  { %v1775_v1 = vpop.eup %1774  ;;  %v775_v47 = vadd.f32 %v774_v59, %v773_v55  ;;  %v961_v13 = vrot.slane %v825_v9, 5  ;;  %v1110_v55 = vrot.slane %v2073_v60, %v250_v15 }
 0x767   :  { %v1777_v4 = vpop.eup %1776  ;;  %1505 = vmatprep.mubr.f32.mxu0 %v1775_v1 }
 0x768   :  { %1506 = vmatmul.mubr.f32.gmra.mrb[10].mxu0 %v1777_v4  ;;  %v823_v10 = vmul.f32 %v1769_v24, %v775_v47  ;;  %v1123_v47 = vld [vmem:[%s2157_s2] sm:$0xff] }
 0x76a   :  { %v959_v7 = vrot.slane %v823_v10, 6 }
 0x76c   :  { %v960_v18 = vsel %vm258_vm2, %v959_v7, %v958_v12  ;;  %v1126_v7 = vld [vmem:[%s2157_s2 + $0x18] sm:$0xff]  ;;  %s1850_s2 = smov [#allocation5]  }
 0x76d   :  { %v962_v19 = vsel %vm260_vm3, %v961_v13, %v960_v18  ;;  %s1194_s6 = sshll.u32 %s1850_s2, 4  ;;  %s1195_s6 = int_to_ptr.vmem [resolvable:$true] %s1194_s6 }
 0x76e   :  { %1541 = vmatmul.mubr.f32.vlgmr.msra.gmra.mrb[6].mxu1 %v962_v19  ;;  %s1816_s7 = scalar_lea.vmem %s1195_s6, 64  ;;  %p1821_p9 = scmp.lt.s32.totalorder %s1195_s6, %s1195_s6 }
 0x76f   :  { %p1817_p8 = scmp.ne.s32.totalorder %s1195_s6, %s1816_s7  ;;  %p1822_p10 = scmp.lt.s32.totalorder %s1816_s7, %s1816_s7 }
 0x771   :  { %p1823_p11 = por %p1822_p10, %p1821_p9 }
 0x773   :  { %p1824_p12 = pnand %p1823_p11, %p1817_p8 }
 0x832   :  { %v1504_v20 = vpop.f32.mrb[8].mxu0 }
 0x833   :  { %v917_v23 = vpop.f32.mrb[9].mxu0  ;;  %v923_v52 = vadd.f32 %v1504_v20, %v850_v44 }
 0x834   :  { %v918_v31 = vadd.f32 %v917_v23, %v850_v44 }
 0x83b   :  { %v1507_v26 = vpop.f32.mrb[10].mxu0 }
 0x83c   :  { %v927_v21 = vpop.f32.mrb[11].mxu0  ;;  %v933_v39 = vadd.f32 %v1507_v26, %v850_v44 }
 0x83d   :  { %v928_v36 = vadd.f32 %v927_v21, %v850_v44 }
 0x841   :  { %v1030_v6 = vpop.f32.mrb[6].mxu1 }
 0x842   :  { %v1041_v28 = vrot.slane %v1030_v6, %v1975_v29  ;;  %v1542_v30 = vpop.f32.mrb[7].mxu1 }
 0x844   :  { %v1042_v48 = vcombine.high %v1041_v28, %v1041_v28  ;;  %v1049_v22 = vrot.slane %v1041_v28, %v1975_v29 }
 0x846   :  { %v1056_v32 = vrot.slane %v1042_v48, %v1975_v29  ;;  %v1057_v33 = vcombine.high %v1049_v22, %v1049_v22  ;;  %v1062_v34 = vrot.slane %v1049_v22, %v1928_v3 }
 0x848   :  { %v1058_v37 = vcombine.high %v1056_v32, %v1056_v32  ;;  %v1066_v38 = vrot.slane %v1056_v32, %v1928_v3  ;;  %v1070_v40 = vrot.slane %v1057_v33, %v1928_v3  ;;  %v1079_v41 = vadd.f32 %v1062_v34, %v918_v31 }
 0x84a   :  { %v1074_v5 = vrot.slane %v1058_v37, %v1928_v3  ;;  %v1080_v61 = vadd.f32 %v1066_v38, %v923_v52  ;;  %v1081_v53 = vadd.f32 %v1070_v40, %v928_v36  ;;  %v1203_v43 = vmul.f32 -1.442695, %v1079_v41 }
 0x84c   :  { %v1082_v56 = vadd.f32 %v1074_v5, %v933_v39  ;;  %1778 = vpow2.f32 %v1203_v43  ;;  %v1204_v29 = vmul.f32 -1.442695, %v1080_v61  ;;  %v1205_v0 = vmul.f32 -1.442695, %v1081_v53 }
 0x84e   :  { %1780 = vpow2.f32 %v1204_v29  ;;  %v1206_v45 = vmul.f32 -1.442695, %v1082_v56 }
 0x84f   :  { %1782 = vpow2.f32 %v1205_v0 }
 0x850   :  { %1784 = vpow2.f32 %v1206_v45 }
 0x856   :  { %v1779_v46 = vpop.eup %1778 }
 0x857   :  { %v1095_v2 = vadd.f32 1.0, %v1779_v46 }
 0x858   :  { %v1781_v49 = vpop.eup %1780 }
 0x859   :  { %v1783_v50 = vpop.eup %1782  ;;  %v1096_v16 = vadd.f32 1.0, %v1781_v49  ;;  %1786 = vrcp.f32 %v1095_v2 }
 0x85a   :  { %v1785_v51 = vpop.eup %1784  ;;  %v1097_v54 = vadd.f32 1.0, %v1783_v50 }
 0x85b   :  { %1788 = vrcp.f32 %v1096_v16  ;;  %v1098_v3 = vadd.f32 1.0, %v1785_v51 }
 0x85c   :  { %1790 = vrcp.f32 %v1097_v54 }
 0x85d   :  { %1792 = vrcp.f32 %v1098_v3 }
 0x863   :  { %v1787_v24 = vpop.eup %1786 }
 0x864   :  { %v1111_v25 = vmul.f32 %v1787_v24, %v1110_v55 }
 0x865   :  { %v1789_v57 = vpop.eup %1788 }
 0x866   :  { %v1791_v58 = vpop.eup %1790  ;;  %1115 = vadd.xlane.f32.xlu1 %v1111_v25  ;;  %v1112_v59 = vmul.f32 %v1789_v57, %v1110_v55 }
 0x867   :  { %v1113_v63 = vmul.f32 %v1791_v58, %v1110_v55  ;;  %v1793_v27 = vpop.eup %1792 }
 0x868   :  { %1117 = vadd.xlane.f32.xlu0 %v1112_v59  ;;  %v1114_v1 = vmul.f32 %v1793_v27, %v1110_v55 }
 0x86a   :  { %1119 = vadd.xlane.f32.xlu1 %v1113_v63 }
 0x86e   :  { %1121 = vadd.xlane.f32.xlu1 %v1114_v1 }
 0x8f3   :  { %v1116_v4 = vpop.xlane.xlu1 %1115 }
 0x8f4   :  { %v1127_v15 = vmul.f32 %v1123_v47, %v1116_v4 }
 0x8f5   :  { %v1118_v60 = vpop.xlane.xlu0 %1117 }
 0x8f6   :  { %v1128_v9 = vmul.f32 %v1124_v62, %v1118_v60  ;;  %1133 = vperm.xlu1 %1729, %v1127_v15  }
 0x8f7   :  { %v1120_v10 = vpop.xlane.xlu1 %1119 }
 0x8f8   :  { %v1129_v11 = vmul.f32 %v1125_v8, %v1120_v10  ;;  %1138 = vperm.xlu0 %1728, %v1128_v9  }
 0x8fa   :  { %1143 = vperm.xlu1 %1729, %v1129_v11  }
 0x8fb   :  { %v1122_v12 = vpop.xlane.xlu1 %1121 }
 0x8fc   :  { %v1130_v13 = vmul.f32 %v1126_v7, %v1122_v12 }
 0x8fe   :  { %1148 = vperm.xlu1 %1729, %v1130_v13  }
 0x975   :  { %v1134_v18 = vpop.permute.xlu1 %1133 }
 0x976   :  { %v1151_v19 = vmul.f32 %v1134_v18, %v2085_v14 }
 0x977   :  { %v1139_v20 = vpop.permute.xlu0 %1138 }
 0x978   :  { %v1155_v23 = vrot.slane %v1151_v19, 4  ;;  %v1152_v26 = vmul.f32 %v1139_v20, %v2081_v17 }
 0x979   :  { %v1144_v21 = vpop.permute.xlu1 %1143 }
 0x97a   :  { %v1156_v6 = vadd.f32 %v1155_v23, %v1151_v19  ;;  %v1161_v44 = vrot.slane %v1152_v26, 4  ;;  %v1153_v28 = vmul.f32 %v1144_v21, %v2101_v42 }
 0x97c   :  { %v1157_v30 = vrot.slane %v1156_v6, 2  ;;  %v1162_v48 = vadd.f32 %v1161_v44, %v1152_v26  ;;  %v1167_v22 = vrot.slane %v1153_v28, 4 }
 0x97d   :  { %v1149_v31 = vpop.permute.xlu1 %1148 }
 0x97e   :  { %v1158_v32 = vadd.f32 %v1157_v30, %v1156_v6  ;;  %v1163_v33 = vrot.slane %v1162_v48, 2  ;;  %v1168_v34 = vadd.f32 %v1167_v22, %v1153_v28  ;;  %v1154_v52 = vmul.f32 %v1149_v31, %v2096_v35 }
 0x980   :  { %v1164_v36 = vadd.f32 %v1163_v33, %v1162_v48  ;;  %v1169_v14 = vrot.slane %v1168_v34, 2  ;;  %v1173_v37 = vrot.slane %v1154_v52, 4  ;;  %v1159_v38 = vrot.slane %v1158_v32, 1 }
 0x982   :  { %v1165_v40 = vrot.slane %v1164_v36, 1  ;;  %v1170_v17 = vadd.f32 %v1169_v14, %v1168_v34  ;;  %v1174_v41 = vadd.f32 %v1173_v37, %v1154_v52  ;;  %v1160_v42 = vadd.f32 %v1159_v38, %v1158_v32 }
 0x984   :  { %v1166_v39 = vadd.f32 %v1165_v40, %v1164_v36  ;;  %v1171_v5 = vrot.slane %v1170_v17, 1  ;;  %v1175_v61 = vrot.slane %v1174_v41, 2 }
 0x986   :  { %v1176_v53 = vadd.f32 %v1175_v61, %v1174_v41  ;;  %v1172_v43 = vadd.f32 %v1171_v5, %v1170_v17  ;;  %v1183_v29 = vsel %vm256_vm1, %v1166_v39, %v1160_v42 }
 0x988   :  { %v1177_v56 = vrot.slane %v1176_v53, 1  ;;  %v1184_v35 = vsel %vm258_vm2, %v1172_v43, %v1183_v29 }
 0x98a   :  { %v1178_v0 = vadd.f32 %v1177_v56, %v1176_v53 }
 0x98c   :  { %v1185_v45 = vsel %vm260_vm3, %v1178_v0, %v1184_v35 }
 0x98d   :  { %1187 = vst [vmem:[#allocation5] sm:$0xf] %v1185_v45 }
 0x98e   :  { %1827 = shalt.err (!%p1824_p12)
}
 0x98f   :  { %s1828_s10 = scalar_lea.hbm %s2160_s5, 64 }
 0x990   :  { %p1829_p13 = scmp.ne.s32.totalorder %s2160_s5, %s1828_s10  ;;  %p1832_p0 = scmp.lt.u32.totalorder %s1828_s10, %s2160_s5 }
 0x992   :  { %p1834_p1 = pnand %p1832_p0, %p1829_p13 }
 0x994   :  { %1837 = shalt.err (!%p1834_p1)
}
 0x995   :  { %1197 = dma.vmem_to_hbm [thread:$0]  %s1195_s6, 64, %s2160_s5, [#allocation4]  }
 0x996   :  { %1840 = dma.done.wait [#allocation4], 64  }
 0x997   :  { %1841 = vsyncadd [#allocation4], 4294967232 }
 0x998   :  { %1201 = vsyncpa [#allocation3], 1 }
 0x999   :  { %1202 = vsyncpa [#allocation4], 1 }

</bundles_post_ra>
